<compile_context>
chip_gen: v6e
topology: v6e:2x2x1
jax: 0.10.0
libtpu: 0.0.40
codegen_flags: <defaults>
</compile_context>

<pallas_src>
import math
import functools

import jax
import jax.numpy as jnp
from jax.experimental import pallas as pl
from jax.experimental.pallas import tpu as pltpu

# MXU runs bf16 natively on v5e/v6e/v7x; accumulate in f32.
MATMUL_DTYPE = jnp.bfloat16

_STACK_ORDER = ('wqkv', 'bqkv', 'wo', 'bo', 'ln1w', 'ln1b',
                'w1', 'b1', 'w2', 'b2', 'ln2w', 'ln2b')
_STACK_MATMUL_W = ('wqkv', 'wo', 'w1', 'w2')


# ----------------------------------------------------------------------------
# Fused encoder-stack kernel (all layers + classifier in one pallas_call)
# ----------------------------------------------------------------------------
def fused_encoder_kernel(x_ref,
                         wqkv_ref, bqkv_ref, wo_ref, bo_ref,
                         ln1w_ref, ln1b_ref,
                         w1_ref, b1_ref, w2_ref, b2_ref,
                         ln2w_ref, ln2b_ref,
                         hmask_ref, kbias_ref, fcw_ref, fcb_ref,
                         out_ref,
                         act_ref,
                         *, num_heads, b_tile, s_pad):
    layer = pl.program_id(1)
    n_layers = pl.num_programs(1)
    TM, D = act_ref.shape                       # TM = b_tile * s_pad (batch folded into M)

    # Load activations into the resident VMEM scratch once per batch tile;
    # they stay in VMEM (bf16) across all layer grid steps.
    @pl.when(layer == 0)
    def _():
        act_ref[...] = x_ref[...]

    x_bf = act_ref[...]                                               # (TM, D) bf16
    x32 = x_bf.astype(jnp.float32)                                    # f32 copy for residuals

    def mm(a_bf16, w_2d):
        # bf16 MXU matmul with f32 accumulation.
        return jnp.dot(a_bf16, w_2d, preferred_element_type=jnp.float32)

    # ---- fused QKV projection: a single (TM, D) @ (D, 3D) matmul ------------------
    # (1/sqrt(dh) has been folded into the Q columns of wqkv/bqkv at init.)
    qkv = mm(x_bf, wqkv_ref[0]) + bqkv_ref[0]                         # (TM, 3D) f32
    qkv_bf = qkv.astype(jnp.bfloat16).reshape(b_tile, s_pad, 3 * D)   # sublane-aligned split
    q = qkv_bf[:, :, 0 * D:1 * D]                                     # (b, S, D) bf16
    k = qkv_bf[:, :, 1 * D:2 * D]
    v = qkv_bf[:, :, 2 * D:3 * D]

    kbias = kbias_ref[...]                                            # (1, S_pad) f32, 0/-1e30

    # ---- head-masked attention (no dh-wide lane slices, no concats) ----------------
    # Zeroing q outside head h makes the full-D contraction equal the per-head dh
    # contraction exactly; the per-head context is merged back with the same 0/1 mask.
    acc = jnp.zeros((b_tile, s_pad, D), jnp.float32)
    for h in range(num_heads):
        m = hmask_ref[h:h + 1, :]                                     # (1, D) bf16 0/1
        qm = q * m                                                    # bf16
        s = jnp.einsum('bqd,bkd->bqk', qm, k,
                       preferred_element_type=jnp.float32)            # (b, S, S)
        s = s + kbias                                                 # mask padded keys
        s = s - jnp.max(s, axis=-1, keepdims=True)
        p = jnp.exp(s)
        p = p * pl.reciprocal(jnp.sum(p, axis=-1, keepdims=True), approx=True)
        ctx = jnp.einsum('bqk,bkd->bqd', p.astype(jnp.bfloat16), v,
                         preferred_element_type=jnp.float32)          # (b, S, D)
        acc = acc + ctx * m.astype(jnp.float32)                       # keep head-h lanes only
    attn = acc.reshape(TM, D)
    attn = mm(attn.astype(jnp.bfloat16), wo_ref[0]) + bo_ref[0]       # (TM, D) f32

    # ---- LayerNorm (biased variance, eps=1e-5), elementwise math in f32 ------------
    def layer_norm(val, w, b):
        mu = jnp.mean(val, axis=-1, keepdims=True)
        var = jnp.mean((val - mu) ** 2, axis=-1, keepdims=True)
        return (val - mu) * jax.lax.rsqrt(var + 1e-5) * w + b

    x1 = layer_norm(x32 + attn, ln1w_ref[0], ln1b_ref[0])
    x1_bf = x1.astype(jnp.bfloat16)

    # ---- position-wise feed forward -------------------------------------------------
    h1 = jnp.maximum(mm(x1_bf, w1_ref[0]) + b1_ref[0], 0.0)
    ff = mm(h1.astype(jnp.bfloat16), w2_ref[0]) + b2_ref[0]
    x2 = layer_norm(x1 + ff, ln2w_ref[0], ln2b_ref[0])
    x2_bf = x2.astype(jnp.bfloat16)

    act_ref[...] = x2_bf                                              # stays resident in VMEM

    # ---- classifier folded into the final layer step (lane-dense 128-wide output) ---
    @pl.when(layer == n_layers - 1)
    def _():
        logits = mm(x2_bf, fcw_ref[...]) + fcb_ref[...]               # (TM, V_pad)
        out_ref[...] = logits.astype(out_ref.dtype)


# ----------------------------------------------------------------------------
# Wrapper around pallas_call
# ----------------------------------------------------------------------------
def run_encoder_stack(x_pad, stacked, fc_w, fc_b, *, num_heads, s_valid):
    # x_pad: (B, S_pad, D) f32, sequence already padded to a multiple of 8.
    B, S_pad, D = x_pad.shape
    L = stacked['wqkv'].shape[0]
    d_ff = stacked['w1'].shape[2]
    V = fc_w.shape[1]
    V_pad = ((V + 127) // 128) * 128

    # Lane-dense classifier: zero-pad the tiny vocab dim to a full 128-lane tile so the
    # output writeback uses unmasked vector stores.
    fc_w_p = jnp.zeros((D, V_pad), MATMUL_DTYPE).at[:, :V].set(fc_w.astype(MATMUL_DTYPE))
    fc_b_p = jnp.zeros((1, V_pad), jnp.float32).at[:, :V].set(fc_b.astype(jnp.float32))

    # 0/1 per-head lane masks and additive key-padding bias (precomputed, resident in VMEM).
    dh = D // num_heads
    head_mask = (jnp.arange(D)[None, :] // dh ==
                 jnp.arange(num_heads)[:, None]).astype(jnp.bfloat16)          # (H, D)
    kbias = jnp.where(jnp.arange(S_pad) < s_valid, 0.0, -1e30)
    kbias = kbias.astype(jnp.float32).reshape(1, S_pad)                         # (1, S_pad)

    # Batch tile: largest divisor of B with <= 1024 flattened rows, while keeping >=2 tiles
    # when B >= 2 so the "parallel" grid axis can feed both TensorCores on v7x.
    row_cap = 1024
    b_tile = 1
    for cand in range(B, 0, -1):
        if B % cand != 0:
            continue
        if cand * S_pad > row_cap:
            continue
        if B >= 2 and (B // cand) < 2:
            continue
        b_tile = cand
        break
    TM = b_tile * S_pad
    num_bt = B // b_tile

    x2d = x_pad.reshape(B * S_pad, D).astype(MATMUL_DTYPE)

    # VMEM budget: double-buffered x/out blocks + double-buffered layer weights + resident
    # activation scratch + resident classifier; 2x margin, clamped to 3/4 of physical VMEM.
    layer_w = (D * 3 * D + D * D + D * d_ff + d_ff * D) * 2              # bf16 matmul weights
    layer_b = (3 * D + D + 2 * D + d_ff + D + 2 * D) * 4                 # f32 biases / LN
    needed = (2 * TM * D * 2                 # x blocks
              + 2 * (layer_w + layer_b)      # layer weights (2-deep pipeline)
              + TM * D * 2                   # resident activation (bf16)
              + 2 * TM * V_pad * 4           # out blocks
              + D * V_pad * 2 + V_pad * 4    # classifier
              + num_heads * D * 2 + S_pad * 4)
    try:
        vmem_cap = int(pltpu.get_tpu_info().vmem_capacity_bytes)
    except Exception:
        vmem_cap = 64 * 1024 * 1024          # conservative (v7x)
    vmem_limit = max(32 * 1024 * 1024, min(2 * needed, vmem_cap * 3 // 4))

    kern = functools.partial(fused_encoder_kernel, num_heads=num_heads,
                             b_tile=b_tile, s_pad=S_pad)

    in_specs = ([pl.BlockSpec((TM, D), lambda bt, l: (bt, 0))]
                + [pl.BlockSpec((1,) + stacked[n].shape[1:], lambda bt, l: (l, 0, 0))
                   for n in _STACK_ORDER]
                + [pl.BlockSpec(head_mask.shape, lambda bt, l: (0, 0)),
                   pl.BlockSpec(kbias.shape, lambda bt, l: (0, 0)),
                   pl.BlockSpec((D, V_pad), lambda bt, l: (0, 0)),
                   pl.BlockSpec((1, V_pad), lambda bt, l: (0, 0))])
    args = ([x2d] + [stacked[n] for n in _STACK_ORDER]
            + [head_mask, kbias, fc_w_p, fc_b_p])

    out = pl.pallas_call(
        kern,
        out_shape=jax.ShapeDtypeStruct((B * S_pad, V_pad), jnp.float32),
        grid=(num_bt, L),
        in_specs=in_specs,
        out_specs=pl.BlockSpec((TM, V_pad), lambda bt, l: (bt, 0)),
        scratch_shapes=[pltpu.VMEM((TM, D), jnp.bfloat16)],
        compiler_params=pltpu.CompilerParams(
            dimension_semantics=("parallel", "arbitrary"),
            vmem_limit_bytes=int(vmem_limit)),
    )(*args)
    return out.reshape(B, S_pad, V_pad), V


# ----------------------------------------------------------------------------
# Parameter init + glue (plain JAX)
# ----------------------------------------------------------------------------
def sinusoidal_pe(max_len, d_model):
    pos = jnp.arange(max_len, dtype=jnp.float32)[:, None]
    div = jnp.exp(jnp.arange(0, d_model, 2, dtype=jnp.float32)
                  * (-math.log(10000.0) / d_model))
    pe = jnp.zeros((max_len, d_model), dtype=jnp.float32)
    pe = pe.at[:, 0::2].set(jnp.sin(pos * div))
    pe = pe.at[:, 1::2].set(jnp.cos(pos * div))
    return pe


def init_params(key, src_vocab, tgt_vocab, d_model, num_heads, d_ff, num_layers):
    def nxt():
        nonlocal key
        key, sub = jax.random.split(key)
        return sub

    def rand(shape, scale=0.05):
        return jax.random.normal(nxt(), shape, dtype=jnp.float32) * scale

    L = num_layers
    dh = d_model // num_heads
    scale = 1.0 / math.sqrt(dh)

    wqkv = rand((L, d_model, 3 * d_model))      # fused Wq|Wk|Wv
    bqkv = rand((L, 1, 3 * d_model))
    # Fold the 1/sqrt(dh) attention scale into the Q projection (weight AND bias):
    # ((x Wq + bq) * scale) . k  ==  scale * (q . k), so semantics are unchanged.
    wqkv = wqkv.at[:, :, :d_model].multiply(scale)
    bqkv = bqkv.at[:, :, :d_model].multiply(scale)

    stacked = {
        'wqkv': wqkv,
        'bqkv': bqkv,
        'wo':   rand((L, d_model, d_model)),
        'bo':   rand((L, 1, d_model)),
        'ln1w': jnp.ones((L, 1, d_model), jnp.float32),
        'ln1b': jnp.zeros((L, 1, d_model), jnp.float32),
        'w1':   rand((L, d_model, d_ff)),
        'b1':   rand((L, 1, d_ff)),
        'w2':   rand((L, d_ff, d_model)),
        'b2':   rand((L, 1, d_model)),
        'ln2w': jnp.ones((L, 1, d_model), jnp.float32),
        'ln2b': jnp.zeros((L, 1, d_model), jnp.float32),
    }
    # Matmul weights in bf16 (halves weight DMA, native MXU dtype);
    # biases / LayerNorm params stay f32 for f32 elementwise math.
    for name in _STACK_MATMUL_W:
        stacked[name] = stacked[name].astype(MATMUL_DTYPE)

    params = {
        'embedding': rand((src_vocab, d_model), 1.0),
        'cls_token': rand((1, d_model), 1.0),
        'fc_w': rand((d_model, tgt_vocab)).astype(MATMUL_DTYPE),
        'fc_b': rand((1, tgt_vocab)),
        'stacked': stacked,
    }
    return params


def transformer_forward(src, params, *, num_heads, max_seq_length):
    # src: (B, S) int32 token ids
    B, S = src.shape
    d_model = params['embedding'].shape[1]

    # embedding + positional encoding (dropout = identity in eval mode)
    emb = params['embedding'][src]                         # (B, S, D)
    pe = sinusoidal_pe(max_seq_length, d_model)[:S]
    src_embedded = emb + pe[None, :, :]

    # CLS token prepended
    cls = jnp.broadcast_to(params['cls_token'][0], (B, 1, d_model))
    x = jnp.concatenate([cls, src_embedded], axis=1)       # (B, S+1, D)

    # pad sequence to a multiple of 8 (sublane aligned); padded keys get -1e30 bias in-kernel
    s_tot = S + 1
    s_pad = ((s_tot + 7) // 8) * 8
    if s_pad != s_tot:
        x = jnp.pad(x, ((0, 0), (0, s_pad - s_tot), (0, 0)))

    logits_pad, V = run_encoder_stack(x, params['stacked'], params['fc_w'], params['fc_b'],
                                      num_heads=num_heads, s_valid=s_tot)  # (B, s_pad, V_pad)
    return logits_pad[:, :s_tot, :V]                                       # (B, S+1, V)


# ----------------------------------------------------------------------------
if __name__ == "__main__":
    # small shapes consistent with the module's forward
    src_vocab_size = 50
    tgt_vocab_size = 8
    d_model = 32
    num_heads = 4
    num_layers = 2
    d_ff = 64
    max_seq_length = 16
    batch = 2
    seq = 8

    key = jax.random.PRNGKey(0)
    kp, kd = jax.random.split(key)
    params = init_params(kp, src_vocab_size, tgt_vocab_size, d_model, num_heads,
                         d_ff, num_layers)
    src = jax.random.randint(kd, (batch, seq), 0, src_vocab_size, dtype=jnp.int32)

    fwd = jax.jit(functools.partial(transformer_forward, num_heads=num_heads,
                                    max_seq_length=max_seq_length))
    out = fwd(src, params)
    out = jax.block_until_ready(out)
    assert out.shape == (batch, seq + 1, tgt_vocab_size), out.shape
    assert bool(jnp.all(jnp.isfinite(out)))
    print("KERNEL_OK")
</pallas_src>

<mosaic_0001>
module attributes {stable_mosaic.version = 11 : i64} {
  func.func @fused_encoder_kernel(%arg0: i32, %arg1: i32, %arg2: memref<16x32xbf16, #tpu.memory_space<vmem>>, %arg3: memref<1x32x96xbf16, #tpu.memory_space<vmem>>, %arg4: memref<1x1x96xf32, #tpu.memory_space<vmem>>, %arg5: memref<1x32x32xbf16, #tpu.memory_space<vmem>>, %arg6: memref<1x1x32xf32, #tpu.memory_space<vmem>>, %arg7: memref<1x1x32xf32, #tpu.memory_space<vmem>>, %arg8: memref<1x1x32xf32, #tpu.memory_space<vmem>>, %arg9: memref<1x32x64xbf16, #tpu.memory_space<vmem>>, %arg10: memref<1x1x64xf32, #tpu.memory_space<vmem>>, %arg11: memref<1x64x32xbf16, #tpu.memory_space<vmem>>, %arg12: memref<1x1x32xf32, #tpu.memory_space<vmem>>, %arg13: memref<1x1x32xf32, #tpu.memory_space<vmem>>, %arg14: memref<1x1x32xf32, #tpu.memory_space<vmem>>, %arg15: memref<4x32xbf16, #tpu.memory_space<vmem>>, %arg16: memref<1x16xf32, #tpu.memory_space<vmem>>, %arg17: memref<32x128xbf16, #tpu.memory_space<vmem>>, %arg18: memref<1x128xf32, #tpu.memory_space<vmem>>, %arg19: memref<16x128xf32, #tpu.memory_space<vmem>>, %arg20: memref<16x32xbf16, #tpu.memory_space<vmem>>) attributes {dimension_semantics = [#tpu.dimension_semantics<parallel>, #tpu.dimension_semantics<arbitrary>], iteration_bounds = array<i64: 2, 2>, scalar_prefetch = 0 : i64, scratch_operands = 1 : i64, tpu.core_type = #tpu.core_type<tc>, window_params = [{transform_indices = @transform_0, window_bounds = array<i64: 16, 32>}, {transform_indices = @transform_1, window_bounds = array<i64: 1, 32, 96>}, {transform_indices = @transform_2, window_bounds = array<i64: 1, 1, 96>}, {transform_indices = @transform_3, window_bounds = array<i64: 1, 32, 32>}, {transform_indices = @transform_4, window_bounds = array<i64: 1, 1, 32>}, {transform_indices = @transform_5, window_bounds = array<i64: 1, 1, 32>}, {transform_indices = @transform_6, window_bounds = array<i64: 1, 1, 32>}, {transform_indices = @transform_7, window_bounds = array<i64: 1, 32, 64>}, {transform_indices = @transform_8, window_bounds = array<i64: 1, 1, 64>}, {transform_indices = @transform_9, window_bounds = array<i64: 1, 64, 32>}, {transform_indices = @transform_10, window_bounds = array<i64: 1, 1, 32>}, {transform_indices = @transform_11, window_bounds = array<i64: 1, 1, 32>}, {transform_indices = @transform_12, window_bounds = array<i64: 1, 1, 32>}, {pipeline_mode = #tpu.pipeline_mode<synchronous>, transform_indices = @transform_13, window_bounds = array<i64: 4, 32>}, {pipeline_mode = #tpu.pipeline_mode<synchronous>, transform_indices = @transform_14, window_bounds = array<i64: 1, 16>}, {pipeline_mode = #tpu.pipeline_mode<synchronous>, transform_indices = @transform_15, window_bounds = array<i64: 32, 128>}, {pipeline_mode = #tpu.pipeline_mode<synchronous>, transform_indices = @transform_16, window_bounds = array<i64: 1, 128>}, {transform_indices = @transform_17, window_bounds = array<i64: 16, 128>}]} {
    %c0_i32 = arith.constant 0 : i32
    %0 = arith.cmpi eq, %arg1, %c0_i32 : i32
    %1 = arith.extui %0 : i1 to i32
    %c0_i32_0 = arith.constant 0 : i32
    %2 = arith.cmpi ne, %1, %c0_i32_0 : i32
    scf.if %2 {
      %c0_79 = arith.constant 0 : index
      %c0_80 = arith.constant 0 : index
      %205 = vector.load %arg2[%c0_79, %c0_80] : memref<16x32xbf16, #tpu.memory_space<vmem>>, vector<16x32xbf16>
      %c0_81 = arith.constant 0 : index
      %c0_82 = arith.constant 0 : index
      %206 = vector.load %arg20[%c0_81, %c0_82] : memref<16x32xbf16, #tpu.memory_space<vmem>>, vector<16x32xbf16>
      tpu.vector_store %arg20[%c0_81, %c0_82], %205 {strides = array<i32>} : memref<16x32xbf16, #tpu.memory_space<vmem>>, vector<16x32xbf16>,
    } else {
    }
    %c0 = arith.constant 0 : index
    %c0_1 = arith.constant 0 : index
    %3 = vector.load %arg20[%c0, %c0_1] : memref<16x32xbf16, #tpu.memory_space<vmem>>, vector<16x32xbf16>
    %4 = arith.extf %3 : vector<16x32xbf16> to vector<16x32xf32>
    %c0_2 = arith.constant 0 : index
    %c0_3 = arith.constant 0 : index
    %c0_4 = arith.constant 0 : index
    %5 = vector.load %arg3[%c0_2, %c0_3, %c0_4] : memref<1x32x96xbf16, #tpu.memory_space<vmem>>, vector<1x32x96xbf16>
    %6 = vector.shape_cast %5 : vector<1x32x96xbf16> to vector<32x96xbf16>
    %cst = arith.constant dense<0.000000e+00> : vector<16x96xf32>
    %7 = tpu.matmul %3, %6, %cst {dimension_numbers = #tpu.dot_dimension_numbers<[1], [0], [0], [1], [0, 0, 1, 1], [], []>} : vector<16x32xbf16>, vector<32x96xbf16>, vector<16x96xf32> -> vector<16x96xf32>
    %c0_5 = arith.constant 0 : index
    %c0_6 = arith.constant 0 : index
    %c0_7 = arith.constant 0 : index
    %8 = vector.load %arg4[%c0_5, %c0_6, %c0_7] : memref<1x1x96xf32, #tpu.memory_space<vmem>>, vector<1x1x96xf32>
    %9 = vector.shape_cast %8 : vector<1x1x96xf32> to vector<1x96xf32>
    %10 = vector.broadcast %9 : vector<1x96xf32> to vector<16x96xf32>
    %11 = arith.addf %7, %10 : vector<16x96xf32>
    %12 = arith.truncf %11 : vector<16x96xf32> to vector<16x96xbf16>
    %13 = vector.shape_cast %12 : vector<16x96xbf16> to vector<1x16x96xbf16>
    %14 = vector.extract_strided_slice %13 {offsets = [0, 0, 0], sizes = [1, 16, 32], strides = [1, 1, 1]} : vector<1x16x96xbf16> to vector<1x16x32xbf16>
    %15 = vector.extract_strided_slice %13 {offsets = [0, 0, 32], sizes = [1, 16, 32], strides = [1, 1, 1]} : vector<1x16x96xbf16> to vector<1x16x32xbf16>
    %16 = vector.extract_strided_slice %13 {offsets = [0, 0, 64], sizes = [1, 16, 32], strides = [1, 1, 1]} : vector<1x16x96xbf16> to vector<1x16x32xbf16>
    %c0_8 = arith.constant 0 : index
    %c0_9 = arith.constant 0 : index
    %17 = vector.load %arg16[%c0_8, %c0_9] : memref<1x16xf32, #tpu.memory_space<vmem>>, vector<1x16xf32>
    %cst_10 = arith.constant 0.000000e+00 : f32
    %18 = vector.broadcast %cst_10 : f32 to vector<1x16x32xf32>
    %c0_11 = arith.constant 0 : index
    %c0_12 = arith.constant 0 : index
    %19 = vector.load %arg15[%c0_11, %c0_12] : memref<4x32xbf16, #tpu.memory_space<vmem>>, vector<1x32xbf16>
    %20 = vector.shape_cast %19 : vector<1x32xbf16> to vector<1x1x32xbf16>
    %21 = vector.broadcast %20 : vector<1x1x32xbf16> to vector<1x16x32xbf16>
    %22 = arith.mulf %14, %21 : vector<1x16x32xbf16>
    "tpu.trace_start"() <{level = 10 : i32, message = "bqd,bkd->bqk"}> : () -> ()
    %cst_13 = arith.constant dense<0.000000e+00> : vector<1x16x16xf32>
    %23 = tpu.matmul %22, %15, %cst_13 {dimension_numbers = #tpu.dot_dimension_numbers<[2], [2], [1], [1], [0, 0, 0, 1, 1, 1], [0], [0]>} : vector<1x16x32xbf16>, vector<1x16x32xbf16>, vector<1x16x16xf32> -> vector<1x16x16xf32>
    "tpu.trace_stop"() : () -> ()
    %24 = vector.shape_cast %17 : vector<1x16xf32> to vector<1x1x16xf32>
    %25 = vector.broadcast %24 : vector<1x1x16xf32> to vector<1x16x16xf32>
    %26 = arith.addf %23, %25 : vector<1x16x16xf32>
    %cst_14 = arith.constant dense<0xFF800000> : vector<1x16xf32>
    %27 = vector.multi_reduction <maximumf>, %26, %cst_14 [2] : vector<1x16x16xf32> to vector<1x16xf32>
    %28 = vector.shape_cast %27 : vector<1x16xf32> to vector<1x16x1xf32>
    %29 = vector.broadcast %28 : vector<1x16x1xf32> to vector<1x16x16xf32>
    %30 = arith.subf %26, %29 : vector<1x16x16xf32>
    %31 = math.exp %30 : vector<1x16x16xf32>
    %cst_15 = arith.constant dense<0.000000e+00> : vector<1x16xf32>
    %32 = vector.multi_reduction <add>, %31, %cst_15 [2] : vector<1x16x16xf32> to vector<1x16xf32>
    %33 = vector.shape_cast %32 : vector<1x16xf32> to vector<1x16x1xf32>
    %34 = tpu.reciprocal %33 {approx = true} : vector<1x16x1xf32> -> vector<1x16x1xf32>
    %35 = vector.broadcast %34 : vector<1x16x1xf32> to vector<1x16x16xf32>
    %36 = arith.mulf %31, %35 : vector<1x16x16xf32>
    %37 = arith.truncf %36 : vector<1x16x16xf32> to vector<1x16x16xbf16>
    "tpu.trace_start"() <{level = 10 : i32, message = "bqk,bkd->bqd"}> : () -> ()
    %cst_16 = arith.constant dense<0.000000e+00> : vector<1x16x32xf32>
    %38 = tpu.matmul %37, %16, %cst_16 {dimension_numbers = #tpu.dot_dimension_numbers<[2], [1], [1], [2], [0, 0, 0, 1, 1, 2], [0], [0]>} : vector<1x16x16xbf16>, vector<1x16x32xbf16>, vector<1x16x32xf32> -> vector<1x16x32xf32>
    "tpu.trace_stop"() : () -> ()
    %39 = arith.extf %19 : vector<1x32xbf16> to vector<1x32xf32>
    %40 = vector.shape_cast %39 : vector<1x32xf32> to vector<1x1x32xf32>
    %41 = vector.broadcast %40 : vector<1x1x32xf32> to vector<1x16x32xf32>
    %42 = arith.mulf %38, %41 : vector<1x16x32xf32>
    %43 = arith.addf %18, %42 : vector<1x16x32xf32>
    %c1 = arith.constant 1 : index
    %c0_17 = arith.constant 0 : index
    %44 = vector.load %arg15[%c1, %c0_17] : memref<4x32xbf16, #tpu.memory_space<vmem>>, vector<1x32xbf16>
    %45 = vector.shape_cast %44 : vector<1x32xbf16> to vector<1x1x32xbf16>
    %46 = vector.broadcast %45 : vector<1x1x32xbf16> to vector<1x16x32xbf16>
    %47 = arith.mulf %14, %46 : vector<1x16x32xbf16>
    "tpu.trace_start"() <{level = 10 : i32, message = "bqd,bkd->bqk"}> : () -> ()
    %cst_18 = arith.constant dense<0.000000e+00> : vector<1x16x16xf32>
    %48 = tpu.matmul %47, %15, %cst_18 {dimension_numbers = #tpu.dot_dimension_numbers<[2], [2], [1], [1], [0, 0, 0, 1, 1, 1], [0], [0]>} : vector<1x16x32xbf16>, vector<1x16x32xbf16>, vector<1x16x16xf32> -> vector<1x16x16xf32>
    "tpu.trace_stop"() : () -> ()
    %49 = vector.shape_cast %17 : vector<1x16xf32> to vector<1x1x16xf32>
    %50 = vector.broadcast %49 : vector<1x1x16xf32> to vector<1x16x16xf32>
    %51 = arith.addf %48, %50 : vector<1x16x16xf32>
    %cst_19 = arith.constant dense<0xFF800000> : vector<1x16xf32>
    %52 = vector.multi_reduction <maximumf>, %51, %cst_19 [2] : vector<1x16x16xf32> to vector<1x16xf32>
    %53 = vector.shape_cast %52 : vector<1x16xf32> to vector<1x16x1xf32>
    %54 = vector.broadcast %53 : vector<1x16x1xf32> to vector<1x16x16xf32>
    %55 = arith.subf %51, %54 : vector<1x16x16xf32>
    %56 = math.exp %55 : vector<1x16x16xf32>
    %cst_20 = arith.constant dense<0.000000e+00> : vector<1x16xf32>
    %57 = vector.multi_reduction <add>, %56, %cst_20 [2] : vector<1x16x16xf32> to vector<1x16xf32>
    %58 = vector.shape_cast %57 : vector<1x16xf32> to vector<1x16x1xf32>
    %59 = tpu.reciprocal %58 {approx = true} : vector<1x16x1xf32> -> vector<1x16x1xf32>
    %60 = vector.broadcast %59 : vector<1x16x1xf32> to vector<1x16x16xf32>
    %61 = arith.mulf %56, %60 : vector<1x16x16xf32>
    %62 = arith.truncf %61 : vector<1x16x16xf32> to vector<1x16x16xbf16>
    "tpu.trace_start"() <{level = 10 : i32, message = "bqk,bkd->bqd"}> : () -> ()
    %cst_21 = arith.constant dense<0.000000e+00> : vector<1x16x32xf32>
    %63 = tpu.matmul %62, %16, %cst_21 {dimension_numbers = #tpu.dot_dimension_numbers<[2], [1], [1], [2], [0, 0, 0, 1, 1, 2], [0], [0]>} : vector<1x16x16xbf16>, vector<1x16x32xbf16>, vector<1x16x32xf32> -> vector<1x16x32xf32>
    "tpu.trace_stop"() : () -> ()
    %64 = arith.extf %44 : vector<1x32xbf16> to vector<1x32xf32>
    %65 = vector.shape_cast %64 : vector<1x32xf32> to vector<1x1x32xf32>
    %66 = vector.broadcast %65 : vector<1x1x32xf32> to vector<1x16x32xf32>
    %67 = arith.mulf %63, %66 : vector<1x16x32xf32>
    %68 = arith.addf %43, %67 : vector<1x16x32xf32>
    %c2 = arith.constant 2 : index
    %c0_22 = arith.constant 0 : index
    %69 = vector.load %arg15[%c2, %c0_22] : memref<4x32xbf16, #tpu.memory_space<vmem>>, vector<1x32xbf16>
    %70 = vector.shape_cast %69 : vector<1x32xbf16> to vector<1x1x32xbf16>
    %71 = vector.broadcast %70 : vector<1x1x32xbf16> to vector<1x16x32xbf16>
    %72 = arith.mulf %14, %71 : vector<1x16x32xbf16>
    "tpu.trace_start"() <{level = 10 : i32, message = "bqd,bkd->bqk"}> : () -> ()
    %cst_23 = arith.constant dense<0.000000e+00> : vector<1x16x16xf32>
    %73 = tpu.matmul %72, %15, %cst_23 {dimension_numbers = #tpu.dot_dimension_numbers<[2], [2], [1], [1], [0, 0, 0, 1, 1, 1], [0], [0]>} : vector<1x16x32xbf16>, vector<1x16x32xbf16>, vector<1x16x16xf32> -> vector<1x16x16xf32>
    "tpu.trace_stop"() : () -> ()
    %74 = vector.shape_cast %17 : vector<1x16xf32> to vector<1x1x16xf32>
    %75 = vector.broadcast %74 : vector<1x1x16xf32> to vector<1x16x16xf32>
    %76 = arith.addf %73, %75 : vector<1x16x16xf32>
    %cst_24 = arith.constant dense<0xFF800000> : vector<1x16xf32>
    %77 = vector.multi_reduction <maximumf>, %76, %cst_24 [2] : vector<1x16x16xf32> to vector<1x16xf32>
    %78 = vector.shape_cast %77 : vector<1x16xf32> to vector<1x16x1xf32>
    %79 = vector.broadcast %78 : vector<1x16x1xf32> to vector<1x16x16xf32>
    %80 = arith.subf %76, %79 : vector<1x16x16xf32>
    %81 = math.exp %80 : vector<1x16x16xf32>
    %cst_25 = arith.constant dense<0.000000e+00> : vector<1x16xf32>
    %82 = vector.multi_reduction <add>, %81, %cst_25 [2] : vector<1x16x16xf32> to vector<1x16xf32>
    %83 = vector.shape_cast %82 : vector<1x16xf32> to vector<1x16x1xf32>
    %84 = tpu.reciprocal %83 {approx = true} : vector<1x16x1xf32> -> vector<1x16x1xf32>
    %85 = vector.broadcast %84 : vector<1x16x1xf32> to vector<1x16x16xf32>
    %86 = arith.mulf %81, %85 : vector<1x16x16xf32>
    %87 = arith.truncf %86 : vector<1x16x16xf32> to vector<1x16x16xbf16>
    "tpu.trace_start"() <{level = 10 : i32, message = "bqk,bkd->bqd"}> : () -> ()
    %cst_26 = arith.constant dense<0.000000e+00> : vector<1x16x32xf32>
    %88 = tpu.matmul %87, %16, %cst_26 {dimension_numbers = #tpu.dot_dimension_numbers<[2], [1], [1], [2], [0, 0, 0, 1, 1, 2], [0], [0]>} : vector<1x16x16xbf16>, vector<1x16x32xbf16>, vector<1x16x32xf32> -> vector<1x16x32xf32>
    "tpu.trace_stop"() : () -> ()
    %89 = arith.extf %69 : vector<1x32xbf16> to vector<1x32xf32>
    %90 = vector.shape_cast %89 : vector<1x32xf32> to vector<1x1x32xf32>
    %91 = vector.broadcast %90 : vector<1x1x32xf32> to vector<1x16x32xf32>
    %92 = arith.mulf %88, %91 : vector<1x16x32xf32>
    %93 = arith.addf %68, %92 : vector<1x16x32xf32>
    %c3 = arith.constant 3 : index
    %c0_27 = arith.constant 0 : index
    %94 = vector.load %arg15[%c3, %c0_27] : memref<4x32xbf16, #tpu.memory_space<vmem>>, vector<1x32xbf16>
    %95 = vector.shape_cast %94 : vector<1x32xbf16> to vector<1x1x32xbf16>
    %96 = vector.broadcast %95 : vector<1x1x32xbf16> to vector<1x16x32xbf16>
    %97 = arith.mulf %14, %96 : vector<1x16x32xbf16>
    "tpu.trace_start"() <{level = 10 : i32, message = "bqd,bkd->bqk"}> : () -> ()
    %cst_28 = arith.constant dense<0.000000e+00> : vector<1x16x16xf32>
    %98 = tpu.matmul %97, %15, %cst_28 {dimension_numbers = #tpu.dot_dimension_numbers<[2], [2], [1], [1], [0, 0, 0, 1, 1, 1], [0], [0]>} : vector<1x16x32xbf16>, vector<1x16x32xbf16>, vector<1x16x16xf32> -> vector<1x16x16xf32>
    "tpu.trace_stop"() : () -> ()
    %99 = vector.shape_cast %17 : vector<1x16xf32> to vector<1x1x16xf32>
    %100 = vector.broadcast %99 : vector<1x1x16xf32> to vector<1x16x16xf32>
    %101 = arith.addf %98, %100 : vector<1x16x16xf32>
    %cst_29 = arith.constant dense<0xFF800000> : vector<1x16xf32>
    %102 = vector.multi_reduction <maximumf>, %101, %cst_29 [2] : vector<1x16x16xf32> to vector<1x16xf32>
    %103 = vector.shape_cast %102 : vector<1x16xf32> to vector<1x16x1xf32>
    %104 = vector.broadcast %103 : vector<1x16x1xf32> to vector<1x16x16xf32>
    %105 = arith.subf %101, %104 : vector<1x16x16xf32>
    %106 = math.exp %105 : vector<1x16x16xf32>
    %cst_30 = arith.constant dense<0.000000e+00> : vector<1x16xf32>
    %107 = vector.multi_reduction <add>, %106, %cst_30 [2] : vector<1x16x16xf32> to vector<1x16xf32>
    %108 = vector.shape_cast %107 : vector<1x16xf32> to vector<1x16x1xf32>
    %109 = tpu.reciprocal %108 {approx = true} : vector<1x16x1xf32> -> vector<1x16x1xf32>
    %110 = vector.broadcast %109 : vector<1x16x1xf32> to vector<1x16x16xf32>
    %111 = arith.mulf %106, %110 : vector<1x16x16xf32>
    %112 = arith.truncf %111 : vector<1x16x16xf32> to vector<1x16x16xbf16>
    "tpu.trace_start"() <{level = 10 : i32, message = "bqk,bkd->bqd"}> : () -> ()
    %cst_31 = arith.constant dense<0.000000e+00> : vector<1x16x32xf32>
    %113 = tpu.matmul %112, %16, %cst_31 {dimension_numbers = #tpu.dot_dimension_numbers<[2], [1], [1], [2], [0, 0, 0, 1, 1, 2], [0], [0]>} : vector<1x16x16xbf16>, vector<1x16x32xbf16>, vector<1x16x32xf32> -> vector<1x16x32xf32>
    "tpu.trace_stop"() : () -> ()
    %114 = arith.extf %94 : vector<1x32xbf16> to vector<1x32xf32>
    %115 = vector.shape_cast %114 : vector<1x32xf32> to vector<1x1x32xf32>
    %116 = vector.broadcast %115 : vector<1x1x32xf32> to vector<1x16x32xf32>
    %117 = arith.mulf %113, %116 : vector<1x16x32xf32>
    %118 = arith.addf %93, %117 : vector<1x16x32xf32>
    %119 = vector.shape_cast %118 : vector<1x16x32xf32> to vector<16x32xf32>
    %120 = arith.truncf %119 : vector<16x32xf32> to vector<16x32xbf16>
    %c0_32 = arith.constant 0 : index
    %c0_33 = arith.constant 0 : index
    %c0_34 = arith.constant 0 : index
    %121 = vector.load %arg5[%c0_32, %c0_33, %c0_34] : memref<1x32x32xbf16, #tpu.memory_space<vmem>>, vector<1x32x32xbf16>
    %122 = vector.shape_cast %121 : vector<1x32x32xbf16> to vector<32x32xbf16>
    %cst_35 = arith.constant dense<0.000000e+00> : vector<16x32xf32>
    %123 = tpu.matmul %120, %122, %cst_35 {dimension_numbers = #tpu.dot_dimension_numbers<[1], [0], [0], [1], [0, 0, 1, 1], [], []>} : vector<16x32xbf16>, vector<32x32xbf16>, vector<16x32xf32> -> vector<16x32xf32>
    %c0_36 = arith.constant 0 : index
    %c0_37 = arith.constant 0 : index
    %c0_38 = arith.constant 0 : index
    %124 = vector.load %arg6[%c0_36, %c0_37, %c0_38] : memref<1x1x32xf32, #tpu.memory_space<vmem>>, vector<1x1x32xf32>
    %125 = vector.shape_cast %124 : vector<1x1x32xf32> to vector<1x32xf32>
    %126 = vector.broadcast %125 : vector<1x32xf32> to vector<16x32xf32>
    %127 = arith.addf %123, %126 : vector<16x32xf32>
    %128 = arith.addf %4, %127 : vector<16x32xf32>
    %c0_39 = arith.constant 0 : index
    %c0_40 = arith.constant 0 : index
    %c0_41 = arith.constant 0 : index
    %129 = vector.load %arg7[%c0_39, %c0_40, %c0_41] : memref<1x1x32xf32, #tpu.memory_space<vmem>>, vector<1x1x32xf32>
    %130 = vector.shape_cast %129 : vector<1x1x32xf32> to vector<1x32xf32>
    %c0_42 = arith.constant 0 : index
    %c0_43 = arith.constant 0 : index
    %c0_44 = arith.constant 0 : index
    %131 = vector.load %arg8[%c0_42, %c0_43, %c0_44] : memref<1x1x32xf32, #tpu.memory_space<vmem>>, vector<1x1x32xf32>
    %132 = vector.shape_cast %131 : vector<1x1x32xf32> to vector<1x32xf32>
    %cst_45 = arith.constant dense<0.000000e+00> : vector<16xf32>
    %133 = vector.multi_reduction <add>, %128, %cst_45 [1] : vector<16x32xf32> to vector<16xf32>
    %134 = vector.shape_cast %133 : vector<16xf32> to vector<16x1xf32>
    %cst_46 = arith.constant 3.200000e+01 : f32
    %135 = vector.broadcast %cst_46 : f32 to vector<16x1xf32>
    %136 = arith.divf %134, %135 : vector<16x1xf32>
    %137 = vector.broadcast %136 : vector<16x1xf32> to vector<16x32xf32>
    %138 = arith.subf %128, %137 : vector<16x32xf32>
    %139 = arith.mulf %138, %138 : vector<16x32xf32>
    %cst_47 = arith.constant dense<0.000000e+00> : vector<16xf32>
    %140 = vector.multi_reduction <add>, %139, %cst_47 [1] : vector<16x32xf32> to vector<16xf32>
    %141 = vector.shape_cast %140 : vector<16xf32> to vector<16x1xf32>
    %cst_48 = arith.constant 3.200000e+01 : f32
    %142 = vector.broadcast %cst_48 : f32 to vector<16x1xf32>
    %143 = arith.divf %141, %142 : vector<16x1xf32>
    %144 = vector.broadcast %136 : vector<16x1xf32> to vector<16x32xf32>
    %145 = arith.subf %128, %144 : vector<16x32xf32>
    %cst_49 = arith.constant 9.99999974E-6 : f32
    %146 = vector.broadcast %cst_49 : f32 to vector<16x1xf32>
    %147 = arith.addf %143, %146 : vector<16x1xf32>
    %148 = math.rsqrt %147 : vector<16x1xf32>
    %149 = vector.broadcast %148 : vector<16x1xf32> to vector<16x32xf32>
    %150 = arith.mulf %145, %149 : vector<16x32xf32>
    %151 = vector.broadcast %130 : vector<1x32xf32> to vector<16x32xf32>
    %152 = arith.mulf %150, %151 : vector<16x32xf32>
    %153 = vector.broadcast %132 : vector<1x32xf32> to vector<16x32xf32>
    %154 = arith.addf %152, %153 : vector<16x32xf32>
    %155 = arith.truncf %154 : vector<16x32xf32> to vector<16x32xbf16>
    %c0_50 = arith.constant 0 : index
    %c0_51 = arith.constant 0 : index
    %c0_52 = arith.constant 0 : index
    %156 = vector.load %arg9[%c0_50, %c0_51, %c0_52] : memref<1x32x64xbf16, #tpu.memory_space<vmem>>, vector<1x32x64xbf16>
    %157 = vector.shape_cast %156 : vector<1x32x64xbf16> to vector<32x64xbf16>
    %cst_53 = arith.constant dense<0.000000e+00> : vector<16x64xf32>
    %158 = tpu.matmul %155, %157, %cst_53 {dimension_numbers = #tpu.dot_dimension_numbers<[1], [0], [0], [1], [0, 0, 1, 1], [], []>} : vector<16x32xbf16>, vector<32x64xbf16>, vector<16x64xf32> -> vector<16x64xf32>
    %c0_54 = arith.constant 0 : index
    %c0_55 = arith.constant 0 : index
    %c0_56 = arith.constant 0 : index
    %159 = vector.load %arg10[%c0_54, %c0_55, %c0_56] : memref<1x1x64xf32, #tpu.memory_space<vmem>>, vector<1x1x64xf32>
    %160 = vector.shape_cast %159 : vector<1x1x64xf32> to vector<1x64xf32>
    %161 = vector.broadcast %160 : vector<1x64xf32> to vector<16x64xf32>
    %162 = arith.addf %158, %161 : vector<16x64xf32>
    %cst_57 = arith.constant 0.000000e+00 : f32
    %163 = vector.broadcast %cst_57 : f32 to vector<16x64xf32>
    %164 = arith.maximumf %162, %163 : vector<16x64xf32>
    %165 = arith.truncf %164 : vector<16x64xf32> to vector<16x64xbf16>
    %c0_58 = arith.constant 0 : index
    %c0_59 = arith.constant 0 : index
    %c0_60 = arith.constant 0 : index
    %166 = vector.load %arg11[%c0_58, %c0_59, %c0_60] : memref<1x64x32xbf16, #tpu.memory_space<vmem>>, vector<1x64x32xbf16>
    %167 = vector.shape_cast %166 : vector<1x64x32xbf16> to vector<64x32xbf16>
    %cst_61 = arith.constant dense<0.000000e+00> : vector<16x32xf32>
    %168 = tpu.matmul %165, %167, %cst_61 {dimension_numbers = #tpu.dot_dimension_numbers<[1], [0], [0], [1], [0, 0, 1, 1], [], []>} : vector<16x64xbf16>, vector<64x32xbf16>, vector<16x32xf32> -> vector<16x32xf32>
    %c0_62 = arith.constant 0 : index
    %c0_63 = arith.constant 0 : index
    %c0_64 = arith.constant 0 : index
    %169 = vector.load %arg12[%c0_62, %c0_63, %c0_64] : memref<1x1x32xf32, #tpu.memory_space<vmem>>, vector<1x1x32xf32>
    %170 = vector.shape_cast %169 : vector<1x1x32xf32> to vector<1x32xf32>
    %171 = vector.broadcast %170 : vector<1x32xf32> to vector<16x32xf32>
    %172 = arith.addf %168, %171 : vector<16x32xf32>
    %173 = arith.addf %154, %172 : vector<16x32xf32>
    %c0_65 = arith.constant 0 : index
    %c0_66 = arith.constant 0 : index
    %c0_67 = arith.constant 0 : index
    %174 = vector.load %arg13[%c0_65, %c0_66, %c0_67] : memref<1x1x32xf32, #tpu.memory_space<vmem>>, vector<1x1x32xf32>
    %175 = vector.shape_cast %174 : vector<1x1x32xf32> to vector<1x32xf32>
    %c0_68 = arith.constant 0 : index
    %c0_69 = arith.constant 0 : index
    %c0_70 = arith.constant 0 : index
    %176 = vector.load %arg14[%c0_68, %c0_69, %c0_70] : memref<1x1x32xf32, #tpu.memory_space<vmem>>, vector<1x1x32xf32>
    %177 = vector.shape_cast %176 : vector<1x1x32xf32> to vector<1x32xf32>
    %cst_71 = arith.constant dense<0.000000e+00> : vector<16xf32>
    %178 = vector.multi_reduction <add>, %173, %cst_71 [1] : vector<16x32xf32> to vector<16xf32>
    %179 = vector.shape_cast %178 : vector<16xf32> to vector<16x1xf32>
    %cst_72 = arith.constant 3.200000e+01 : f32
    %180 = vector.broadcast %cst_72 : f32 to vector<16x1xf32>
    %181 = arith.divf %179, %180 : vector<16x1xf32>
    %182 = vector.broadcast %181 : vector<16x1xf32> to vector<16x32xf32>
    %183 = arith.subf %173, %182 : vector<16x32xf32>
    %184 = arith.mulf %183, %183 : vector<16x32xf32>
    %cst_73 = arith.constant dense<0.000000e+00> : vector<16xf32>
    %185 = vector.multi_reduction <add>, %184, %cst_73 [1] : vector<16x32xf32> to vector<16xf32>
    %186 = vector.shape_cast %185 : vector<16xf32> to vector<16x1xf32>
    %cst_74 = arith.constant 3.200000e+01 : f32
    %187 = vector.broadcast %cst_74 : f32 to vector<16x1xf32>
    %188 = arith.divf %186, %187 : vector<16x1xf32>
    %189 = vector.broadcast %181 : vector<16x1xf32> to vector<16x32xf32>
    %190 = arith.subf %173, %189 : vector<16x32xf32>
    %cst_75 = arith.constant 9.99999974E-6 : f32
    %191 = vector.broadcast %cst_75 : f32 to vector<16x1xf32>
    %192 = arith.addf %188, %191 : vector<16x1xf32>
    %193 = math.rsqrt %192 : vector<16x1xf32>
    %194 = vector.broadcast %193 : vector<16x1xf32> to vector<16x32xf32>
    %195 = arith.mulf %190, %194 : vector<16x32xf32>
    %196 = vector.broadcast %175 : vector<1x32xf32> to vector<16x32xf32>
    %197 = arith.mulf %195, %196 : vector<16x32xf32>
    %198 = vector.broadcast %177 : vector<1x32xf32> to vector<16x32xf32>
    %199 = arith.addf %197, %198 : vector<16x32xf32>
    %200 = arith.truncf %199 : vector<16x32xf32> to vector<16x32xbf16>
    %c0_76 = arith.constant 0 : index
    %c0_77 = arith.constant 0 : index
    %201 = vector.load %arg20[%c0_76, %c0_77] : memref<16x32xbf16, #tpu.memory_space<vmem>>, vector<16x32xbf16>
    tpu.vector_store %arg20[%c0_76, %c0_77], %200 {strides = array<i32>} : memref<16x32xbf16, #tpu.memory_space<vmem>>, vector<16x32xbf16>,
    %c1_i32 = arith.constant 1 : i32
    %202 = arith.cmpi eq, %arg1, %c1_i32 : i32
    %203 = arith.extui %202 : i1 to i32
    %c0_i32_78 = arith.constant 0 : i32
    %204 = arith.cmpi ne, %203, %c0_i32_78 : i32
    scf.if %204 {
      %c0_79 = arith.constant 0 : index
      %c0_80 = arith.constant 0 : index
      %205 = vector.load %arg17[%c0_79, %c0_80] : memref<32x128xbf16, #tpu.memory_space<vmem>>, vector<32x128xbf16>
      %cst_81 = arith.constant dense<0.000000e+00> : vector<16x128xf32>
      %206 = tpu.matmul %200, %205, %cst_81 {dimension_numbers = #tpu.dot_dimension_numbers<[1], [0], [0], [1], [0, 0, 1, 1], [], []>} : vector<16x32xbf16>, vector<32x128xbf16>, vector<16x128xf32> -> vector<16x128xf32>
      %c0_82 = arith.constant 0 : index
      %c0_83 = arith.constant 0 : index
      %207 = vector.load %arg18[%c0_82, %c0_83] : memref<1x128xf32, #tpu.memory_space<vmem>>, vector<1x128xf32>
      %208 = vector.broadcast %207 : vector<1x128xf32> to vector<16x128xf32>
      %209 = arith.addf %206, %208 : vector<16x128xf32>
      %c0_84 = arith.constant 0 : index
      %c0_85 = arith.constant 0 : index
      %210 = vector.load %arg19[%c0_84, %c0_85] : memref<16x128xf32, #tpu.memory_space<vmem>>, vector<16x128xf32>
      tpu.vector_store %arg19[%c0_84, %c0_85], %209 {strides = array<i32>} : memref<16x128xf32, #tpu.memory_space<vmem>>, vector<16x128xf32>,
    } else {
    }
    return
  }
  func.func @transform_0(%arg0: i32, %arg1: i32) -> (i32, i32) {
    %c0_i32 = arith.constant 0 : i32
    %c0_i32_0 = arith.constant 0 : i32
    return %arg0, %c0_i32 : i32, i32
  }
  func.func @transform_1(%arg0: i32, %arg1: i32) -> (i32, i32, i32) {
    %c0_i32 = arith.constant 0 : i32
    %c0_i32_0 = arith.constant 0 : i32
    %c0_i32_1 = arith.constant 0 : i32
    return %arg1, %c0_i32, %c0_i32_0 : i32, i32, i32
  }
  func.func @transform_2(%arg0: i32, %arg1: i32) -> (i32, i32, i32) {
    %c0_i32 = arith.constant 0 : i32
    %c0_i32_0 = arith.constant 0 : i32
    %c0_i32_1 = arith.constant 0 : i32
    return %arg1, %c0_i32, %c0_i32_0 : i32, i32, i32
  }
  func.func @transform_3(%arg0: i32, %arg1: i32) -> (i32, i32, i32) {
    %c0_i32 = arith.constant 0 : i32
    %c0_i32_0 = arith.constant 0 : i32
    %c0_i32_1 = arith.constant 0 : i32
    return %arg1, %c0_i32, %c0_i32_0 : i32, i32, i32
  }
  func.func @transform_4(%arg0: i32, %arg1: i32) -> (i32, i32, i32) {
    %c0_i32 = arith.constant 0 : i32
    %c0_i32_0 = arith.constant 0 : i32
    %c0_i32_1 = arith.constant 0 : i32
    return %arg1, %c0_i32, %c0_i32_0 : i32, i32, i32
  }
  func.func @transform_5(%arg0: i32, %arg1: i32) -> (i32, i32, i32) {
    %c0_i32 = arith.constant 0 : i32
    %c0_i32_0 = arith.constant 0 : i32
    %c0_i32_1 = arith.constant 0 : i32
    return %arg1, %c0_i32, %c0_i32_0 : i32, i32, i32
  }
  func.func @transform_6(%arg0: i32, %arg1: i32) -> (i32, i32, i32) {
    %c0_i32 = arith.constant 0 : i32
    %c0_i32_0 = arith.constant 0 : i32
    %c0_i32_1 = arith.constant 0 : i32
    return %arg1, %c0_i32, %c0_i32_0 : i32, i32, i32
  }
  func.func @transform_7(%arg0: i32, %arg1: i32) -> (i32, i32, i32) {
    %c0_i32 = arith.constant 0 : i32
    %c0_i32_0 = arith.constant 0 : i32
    %c0_i32_1 = arith.constant 0 : i32
    return %arg1, %c0_i32, %c0_i32_0 : i32, i32, i32
  }
  func.func @transform_8(%arg0: i32, %arg1: i32) -> (i32, i32, i32) {
    %c0_i32 = arith.constant 0 : i32
    %c0_i32_0 = arith.constant 0 : i32
    %c0_i32_1 = arith.constant 0 : i32
    return %arg1, %c0_i32, %c0_i32_0 : i32, i32, i32
  }
  func.func @transform_9(%arg0: i32, %arg1: i32) -> (i32, i32, i32) {
    %c0_i32 = arith.constant 0 : i32
    %c0_i32_0 = arith.constant 0 : i32
    %c0_i32_1 = arith.constant 0 : i32
    return %arg1, %c0_i32, %c0_i32_0 : i32, i32, i32
  }
  func.func @transform_10(%arg0: i32, %arg1: i32) -> (i32, i32, i32) {
    %c0_i32 = arith.constant 0 : i32
    %c0_i32_0 = arith.constant 0 : i32
    %c0_i32_1 = arith.constant 0 : i32
    return %arg1, %c0_i32, %c0_i32_0 : i32, i32, i32
  }
  func.func @transform_11(%arg0: i32, %arg1: i32) -> (i32, i32, i32) {
    %c0_i32 = arith.constant 0 : i32
    %c0_i32_0 = arith.constant 0 : i32
    %c0_i32_1 = arith.constant 0 : i32
    return %arg1, %c0_i32, %c0_i32_0 : i32, i32, i32
  }
  func.func @transform_12(%arg0: i32, %arg1: i32) -> (i32, i32, i32) {
    %c0_i32 = arith.constant 0 : i32
    %c0_i32_0 = arith.constant 0 : i32
    %c0_i32_1 = arith.constant 0 : i32
    return %arg1, %c0_i32, %c0_i32_0 : i32, i32, i32
  }
  func.func @transform_13(%arg0: i32, %arg1: i32) -> (i32, i32) {
    %c0_i32 = arith.constant 0 : i32
    %c0_i32_0 = arith.constant 0 : i32
    %c0_i32_1 = arith.constant 0 : i32
    return %c0_i32, %c0_i32_0 : i32, i32
  }
  func.func @transform_14(%arg0: i32, %arg1: i32) -> (i32, i32) {
    %c0_i32 = arith.constant 0 : i32
    %c0_i32_0 = arith.constant 0 : i32
    %c0_i32_1 = arith.constant 0 : i32
    return %c0_i32, %c0_i32_0 : i32, i32
  }
  func.func @transform_15(%arg0: i32, %arg1: i32) -> (i32, i32) {
    %c0_i32 = arith.constant 0 : i32
    %c0_i32_0 = arith.constant 0 : i32
    %c0_i32_1 = arith.constant 0 : i32
    return %c0_i32, %c0_i32_0 : i32, i32
  }
  func.func @transform_16(%arg0: i32, %arg1: i32) -> (i32, i32) {
    %c0_i32 = arith.constant 0 : i32
    %c0_i32_0 = arith.constant 0 : i32
    %c0_i32_1 = arith.constant 0 : i32
    return %c0_i32, %c0_i32_0 : i32, i32
  }
  func.func @transform_17(%arg0: i32, %arg1: i32) -> (i32, i32) {
    %c0_i32 = arith.constant 0 : i32
    %c0_i32_0 = arith.constant 0 : i32
    return %arg0, %c0_i32 : i32, i32
  }
}

</mosaic_0001>

<bundles_post_ra>
// kernel: transformer_forward.1
= control target key start
LH: loop header
LB: loop body
LE: loop exit
PB: predicated region body
PF: predicated region fallthrough
CT: control target
= control target key end

     0   :  { %s2393_s24 = smov 0   ;;  %s2395_s25 = smov 0   ;;  %s2706_s0 = inlined_call_operand.vmem [shape: bf16[32,32], index: 0, kind: input, shape index: {}]   ;;  %s2707_s1 = inlined_call_operand.vmem [shape: bf16[2,32,96], index: 1, kind: input, shape index: {}]   ;;  %s2708_s2 = inlined_call_operand.vmem [shape: f32[2,1,96], index: 2, kind: input, shape index: {}]   ;;  %s2709_s3 = inlined_call_operand.vmem [shape: bf16[2,32,32], index: 3, kind: input, shape index: {}]   ;;  %s2710_s4 = inlined_call_operand.vmem [shape: f32[2,1,32], index: 4, kind: input, shape index: {}]   ;;  %s2711_s5 = inlined_call_operand.vmem [shape: f32[2,1,32], index: 5, kind: input, shape index: {}]   ;;  %s2712_s6 = inlined_call_operand.vmem [shape: f32[2,1,32], index: 6, kind: input, shape index: {}]   ;;  %s2713_s7 = inlined_call_operand.vmem [shape: bf16[2,32,64], index: 7, kind: input, shape index: {}]   ;;  %s2714_s8 = inlined_call_operand.vmem [shape: f32[2,1,64], index: 8, kind: input, shape index: {}]   ;;  %s2715_s9 = inlined_call_operand.vmem [shape: bf16[2,64,32], index: 9, kind: input, shape index: {}]   ;;  %s2716_s10 = inlined_call_operand.vmem [shape: f32[2,1,32], index: 10, kind: input, shape index: {}]   ;;  %s2717_s11 = inlined_call_operand.vmem [shape: f32[2,1,32], index: 11, kind: input, shape index: {}]   ;;  %s2718_s12 = inlined_call_operand.vmem [shape: f32[2,1,32], index: 12, kind: input, shape index: {}]   ;;  %s2719_s13 = inlined_call_operand.vmem [shape: bf16[4,32], index: 13, kind: input, shape index: {}]   ;;  %s2720_s14 = inlined_call_operand.vmem [shape: f32[1,16], index: 14, kind: input, shape index: {}]   ;;  %s2721_s15 = inlined_call_operand.vmem [shape: bf16[32,128], index: 15, kind: input, shape index: {}]   ;;  %s2722_s16 = inlined_call_operand.vmem [shape: f32[1,128], index: 16, kind: input, shape index: {}]   ;;  %s2723_s17 = inlined_call_operand.vmem [shape: f32[32,128], index: 17, kind: output, shape index: {}]  }
   0x1   :  { %2730 = sst [smem:[#allocation9_spill]] %s2706_s0  ;;  %s2397_s26 = smov 0  }
   0x2   :  { %2731 = sst [smem:[#allocation10_spill]] %s2707_s1  ;;  %s2399_s27 = smov 0  }
   0x3   :  { %2732 = sst [smem:[#allocation11_spill]] %s2708_s2  ;;  %s2401_s28 = smov 0  }
   0x4   :  { %2733 = sst [smem:[#allocation12_spill]] %s2709_s3 }
   0x5   :  { %2734 = sst [smem:[#allocation13_spill]] %s2713_s7 }
   0x6   :  { %2735 = sst [smem:[#allocation14_spill]] %s2714_s8 }
   0x7   :  { %2736 = sst [smem:[#allocation15_spill]] %s2718_s12 }
   0x8   :  { %2737 = sst [smem:[#allocation16_spill]] %s2719_s13 }
   0x9   :  { %2738 = sst [smem:[#allocation17_spill]] %s2720_s14 }
   0xa   :  { %2739 = sst [smem:[#allocation18_spill]] %s2721_s15 }
   0xb   :  { %2740 = sst [smem:[#allocation19_spill]] %s2722_s16 }
   0xc   :  { %2741 = sst [smem:[#allocation20_spill]] %s2723_s17 }
   0xd LB: > { %2742 = sst [smem:[#allocation3_spill]] %s2279_s24  ;;  %s36_s29 = sadd.s32 1, %s2287_s26  ;;  %s2295_s28 = sphi %s2401_s28, %s27_s28   ;;  %s2291_s27 = sphi %s2399_s27, %s2774_s27   ;;  %s2287_s26 = sphi %s2397_s26, %s2773_s26   ;;  %s2283_s25 = sphi %s2395_s25, %s2772_s25   ;;  %s2279_s24 = sphi %s2393_s24, %s2771_s24  }
   0xe   : > { %2743 = sst [smem:[#allocation4_spill]] %s2287_s26  ;;  %s39_s0 = sadd.s32 1, %s2291_s27 }
   0xf   : > { %2744 = sst [smem:[#allocation5_spill]] %s2291_s27  ;;  %p37_p0 = scmp.ge.s32.totalorder %s36_s29, 2 }
  0x10   : > { %2745 = sst [smem:[#allocation6_spill]] %s2295_s28  ;;  %p1971_p1 = scmp.ge.s32.totalorder %s2295_s28, 1 }
  0x11   : > { %p604_p2 = scmp.lt.s32.totalorder %s2295_s28, 5  ;;  %s2776_s29 = smov (%p37_p0, %s36_s29), 0 }
  0x12   : > { %2746 = sst [smem:[#allocation7_spill]] %s2776_s29  ;;  %s2778_s0 = smov (!%p37_p0, %s39_s0), %s2291_s27 }
  0x13   : > { %p605_p3 = pnand %p1971_p1, %p604_p2  ;;  %p41_p4 = scmp.ge.s32.totalorder %s2778_s0, 2 }
  0x14   : > { %s1972_s30 = sshll.u32 (!%p605_p3), %s2283_s25, 1  ;;  %p706_p5 = scmp.lt.s32.totalorder (!%p605_p3), %s2279_s24, 1 }
  0x15   : > { %s2780_s0 = smov (%p41_p4, %s2778_s0), 0  ;;  %608 = sbr.rel (%p605_p3) target bundleno = 2567 (0xa07), region = 88 }
  0x16   : > { %2747 = sst [smem:[#allocation8_spill]] %s2780_s0  ;;  %p701_p6 = scmp.lt.s32.totalorder (!%p605_p3), %s1972_s30, 3 }
  0x17   : > { %s2749_s0 = sld [smem:[#allocation10_spill]] (!%p605_p3) }
  0x18   : > { %s2750_s28 = sld [smem:[#allocation9_spill]] (!%p605_p3) }
  0x19   : > { %s2751_s3 = sld [smem:[#allocation12_spill]] (!%p605_p3) }
  0x1a   : > { %s2427_s18 = scalar_select %p706_p5, %s2279_s24, 1 }
  0x1b   : > { %s2782_s30 = smov (!%p701_p6, %s1972_s30), 3  ;;  %s2752_s7 = sld [smem:[#allocation13_spill]] }
  0x1c   : > { %s2026_s19 = sshll.u32 %s2427_s18, 4  ;;  %s1973_s22 = sshll.u32 %s2782_s30, 2 }
  0x1d   : > { %s710_s29 = scalar_lea.vmem %s2749_s0, %s2026_s19  ;;  %s743_s2 = scalar_lea.vmem %s2716_s10, %s2427_s18 }
  0x1e   : > { %s704_s16 = scalar_lea.vmem %s2750_s28, %s1973_s22  ;;  %s2029_s22 = sshll.u32 %s2427_s18, 5 }
  0x1f   : > { %s2443_s13 = scalar_lea.vmem %s2751_s3, %s2026_s19  ;;  %s2470_s12 = scalar_lea.vmem %s2715_s9, %s2029_s22 }
  0x20   : > { %s746_s25 = scalar_lea.vmem %s2717_s11, %s2427_s18  ;;  %s2754_s21 = sld [smem:[#allocation15_spill]] }
  0x21   : > { %s2460_s27 = scalar_lea.vmem %s2752_s7, %s2026_s19  ;;  %s1983_s14 = sshll.u32 %s2782_s30, 3 }
  0x22   : > { %s2755_s7 = sld [smem:[#allocation20_spill]] }
  0x23   : > { %s2756_s22 = sld [smem:[#allocation3_spill]] }
  0x26   : > { %s749_s3 = scalar_lea.vmem %s2754_s21, %s2427_s18 }
  0x28   : > { %s2487_s8 = scalar_lea.vmem %s2755_s7, %s1983_s14 }
  0x29   : > { %p1984_p7 = scmp.ne.s32.totalorder %s2756_s22, 0 }
  0x2b   : > { %760 = sbr.rel (%p1984_p7) target bundleno = 50 (0x32), region = 92 }
  0x30   : > { %v761_v0 = vld [vmem:[%s704_s16] sm:$0xf]  ;;  %vm763_vm0 = vcmask 257024   ;;  %v762_v1 = vld [vmem:[%s704_s16 + $0x4] sm:$0xf] }
  0x31   : > { %764 = vst.msk [vmem:[#allocation2] sm:$0xf] %vm763_vm0, %v761_v0  ;;  %765 = vst.msk [vmem:[#allocation2 + $0x4] sm:$0xf] %vm763_vm0, %v762_v1 }
  0x32 PF: > { %v2203_v2 = vld [vmem:[%s710_s29 + $0x8] sm:$0xff]   ;;  %v2297_v3 = vmov 0.0   ;;  %v2204_v4 = vld [vmem:[%s710_s29] sm:$0xff]   ;;  %vm2298_vm1 = vmmov 0   ;;  %vm798_vm2 = vcmask 261120   ;;  %s2757_s29 = sld [smem:[#allocation11_spill]]  ;;  %v849_v14 = vlaneseq  ;;  %s2763_s24 = scalar_lea.vmem %s2712_s6, %s2427_s18 }
  0x33   : > { %2065 = vmatprep.subr.bf16.mxu0 %v2297_v3  ;;  %2073 = vmatprep.subr.bf16.mxu1 %v2297_v3  ;;  %s2299_s21 = smov 96   ;;  %s2759_s17 = sld [smem:[#allocation16_spill]]  ;;  %vm910_vm3 = vcmask 130048   ;;  %vm1604_vm4 = vcmask 523264   ;;  %vm1703_vm5 = vcmask 257024  }
  0x34   : > { %2066 = vmatpush3.bf16.msra.mxu0 %v2203_v2  ;;  %2069 = vmatprep.mubr.msk.bf16.mxu0 %vm2298_vm1, %v2297_v3  ;;  %v2512_v15 = vshrl.u32 %v849_v14, 7  ;;  %s2760_s22 = sld [smem:[#allocation17_spill]]  ;;  %s2300_s7 = smov 64  }
  0x35   : > { %2067 = vmatprep.subr.bf16.mxu0 %v2297_v3  ;;  %2075 = vmatprep.mubr.msk.bf16.mxu1 %vm2298_vm1, %v2297_v3  ;;  %s2764_s23 = sld [smem:[#allocation14_spill]] }
  0x36   : > { %v2522_v18 = vsub.s32 0, %v2512_v15  ;;  %v2546_v29 = vsub.s32 1, %v2512_v15 }
  0x38   : > { %v2494_v5 = vld [vmem:[#allocation2] sm:$0xff]   ;;  %2068 = vmatpush3.bf16.msra.mxu0 %v2204_v4  ;;  %s2758_s30 = scalar_lea.vmem %s2757_s29, %s2427_s18  ;;  %s2761_s29 = scalar_lea.vmem %s2710_s4, %s2427_s18 }
  0x39   : > { %2079 = vmatprep.subr.bf16.mxu0 %v2297_v3  ;;  %v1985_v7 = vld [vmem:[%s2758_s30] ss:$0 sm:$0xff]  ;;  %v2542_v27 = vld [vmem:[%s2759_s17] sm:$0x2] }
  0x3a   : > { %v2517_v16 = vld [vmem:[%s2759_s17] sm:$0x1]  ;;  %v1122_v30 = vpack.i.b16 %v2542_v27, %v2542_v27  ;;  %v2553_v31 = vld [vmem:[%s2759_s17] sm:$0x2] }
  0x3b   : > { %2070 = vmatmul.mubr.msk.bf16.vlgmr.msra.gmra.mxu0 %vm798_vm2, %v2494_v5  ;;  %v847_v17 = vpack.i.b16 %v2517_v16, %v2517_v16  ;;  %v2527_v20 = vld [vmem:[%s2759_s17] sm:$0x1]  ;;  %v1251_v33 = vshrl.u32 %v2553_v31, 16  ;;  %s2765_s19 = scalar_lea.vmem %s2764_s23, %s2427_s18 }
  0x3c   : > { %2081 = vmatprep.mubr.msk.bf16.mxu0 %vm2298_vm1, %v2297_v3  ;;  %v992_v23 = vshrl.u32 %v2527_v20, 16  ;;  %v1127_v32 = vrot.slane %v1122_v30, %v2546_v29  ;;  %v1990_v38 = vld [vmem:[%s2760_s22] ss:$0 sm:$0xff] }
  0x3d   : > { %v852_v22 = vrot.slane %v847_v17, %v2522_v18  ;;  %v1252_v35 = vpack.i.b16 %v1251_v33, %v1251_v33 }
  0x3e   : > { %v993_v25 = vpack.i.b16 %v992_v23, %v992_v23 }
  0x3f   : > { %v1257_v36 = vrot.slane %v1252_v35, %v2546_v29 }
  0x40   : > { %v998_v26 = vrot.slane %v993_v25, %v2522_v18 }
  0xfb   : > { %v836_v6 = vpop.f32.mrf.mxu0 }
  0xfc   : > { %v837_v10 = vadd.f32 %v1985_v7, %v836_v6 }
  0xfd   : > { %v2071_v8 = vpop.f32.mrf.mxu0 }
  0xff   : > { %v839_v9 = vpop.f32.mrf.mxu0 }
 0x100   : > { %v840_v11 = vadd.f32 %v1985_v7, %v839_v9 }
 0x101   : > { %v2072_v12 = vpop.f32.mrf.mxu0 }
 0x102   : > { %v2509_v13 = vpack.c.bf16 %v840_v11, %v837_v10 }
 0x104   : > { %861 = vrot.lane.b32.xlu0 %v2509_v13, %s2299_s21  ;;  %v853_v24 = vmul.bf16 %v852_v22, %v2509_v13  ;;  %v999_v28 = vmul.bf16 %v998_v26, %v2509_v13  ;;  %v1128_v34 = vmul.bf16 %v1127_v32, %v2509_v13  ;;  %v1258_v37 = vmul.bf16 %v1257_v36, %v2509_v13  ;;  %s2762_s21 = scalar_lea.vmem %s2711_s5, %s2427_s18 }
 0x176   : > { %v862_v19 = vpop.permute.xlu0 %861 }
 0x177   : > { %v867_v21 = vsel %vm798_vm2, %v862_v19, 0 }
 0x178   : > { %2074 = vmatpush3.bf16.xpose.msra.mxu1 %v867_v21 }
 0x179   : > { %2085 = vmatprep.subr.bf16.mxu1 %v2297_v3 }
 0x17f   : > { %2076 = vmatmul.mubr.msk.bf16.vlgmr.msra.gmra.mxu1 %vm798_vm2, %v853_v24 }
 0x180   : > { %2086 = vmatpush3.bf16.xpose.msra.mxu1 %v867_v21  ;;  %2087 = vmatprep.mubr.msk.bf16.mxu1 %vm2298_vm1, %v2297_v3 }
 0x181   : > { %2097 = vmatprep.subr.bf16.mxu1 %v2297_v3 }
 0x187   : > { %2088 = vmatmul.mubr.msk.bf16.vlgmr.msra.gmra.mxu1 %vm798_vm2, %v999_v28 }
 0x188   : > { %2098 = vmatpush3.bf16.xpose.msra.mxu1 %v867_v21  ;;  %2099 = vmatprep.mubr.msk.bf16.mxu1 %vm2298_vm1, %v2297_v3 }
 0x189   : > { %2109 = vmatprep.subr.bf16.mxu1 %v2297_v3 }
 0x18f   : > { %2100 = vmatmul.mubr.msk.bf16.vlgmr.msra.gmra.mxu1 %vm798_vm2, %v1128_v34 }
 0x190   : > { %2110 = vmatpush3.bf16.xpose.msra.mxu1 %v867_v21  ;;  %2111 = vmatprep.mubr.msk.bf16.mxu1 %vm2298_vm1, %v2297_v3 }
 0x191   : > { %2121 = vmatprep.subr.bf16.mxu1 %v2297_v3 }
 0x197   : > { %2112 = vmatmul.mubr.msk.bf16.vlgmr.msra.gmra.mxu1 %vm798_vm2, %v1258_v37 }
 0x198   : > { %2125 = vmatprep.mubr.msk.bf16.mxu1 %vm2298_vm1, %v2297_v3 }
 0x23f   : > { %v903_v39 = vpop.f32.mrf.mxu1 }
 0x240   : > { %v904_v40 = vadd.f32 %v1990_v38, %v903_v39 }
 0x241   : > { %v2077_v41 = vpop.f32.mrf.mxu1 }
 0x242   : > { %v911_v42 = vsel %vm910_vm3, %v904_v40, -inf }
 0x243   : > { %912 = vmax.xlane.f32.xlu0 %v911_v42  ;;  %v906_v43 = vpop.f32.mrf.mxu1 }
 0x244   : > { %v907_v44 = vadd.f32 %v1990_v38, %v906_v43 }
 0x245   : > { %v2078_v45 = vpop.f32.mrf.mxu1 }
 0x246   : > { %v914_v46 = vsel %vm910_vm3, %v907_v44, -inf }
 0x247   : > { %915 = vmax.xlane.f32.xlu1 %v914_v46  ;;  %v1037_v47 = vpop.f32.mrf.mxu1 }
 0x248   : > { %v1038_v48 = vadd.f32 %v1990_v38, %v1037_v47 }
 0x249   : > { %v2089_v49 = vpop.f32.mrf.mxu1 }
 0x24a   : > { %v1044_v50 = vsel %vm910_vm3, %v1038_v48, -inf }
 0x24b   : > { %1045 = vmax.xlane.f32.xlu1 %v1044_v50  ;;  %v1040_v51 = vpop.f32.mrf.mxu1 }
 0x24c   : > { %v1041_v52 = vadd.f32 %v1990_v38, %v1040_v51 }
 0x24d   : > { %v2090_v53 = vpop.f32.mrf.mxu1 }
 0x24e   : > { %v1047_v54 = vsel %vm910_vm3, %v1041_v52, -inf }
 0x24f   : > { %1048 = vmax.xlane.f32.xlu1 %v1047_v54  ;;  %v1166_v55 = vpop.f32.mrf.mxu1 }
 0x250   : > { %v1167_v56 = vadd.f32 %v1990_v38, %v1166_v55 }
 0x251   : > { %v2101_v57 = vpop.f32.mrf.mxu1 }
 0x252   : > { %v1173_v58 = vsel %vm910_vm3, %v1167_v56, -inf }
 0x253   : > { %1174 = vmax.xlane.f32.xlu1 %v1173_v58  ;;  %v1169_v59 = vpop.f32.mrf.mxu1 }
 0x254   : > { %v1170_v60 = vadd.f32 %v1990_v38, %v1169_v59 }
 0x255   : > { %v2102_v61 = vpop.f32.mrf.mxu1 }
 0x256   : > { %v1176_v62 = vsel %vm910_vm3, %v1170_v60, -inf }
 0x257   : > { %1177 = vmax.xlane.f32.xlu1 %v1176_v62  ;;  %v1296_v63 = vpop.f32.mrf.mxu1 }
 0x258   : > { %v1297_v0 = vadd.f32 %v1990_v38, %v1296_v63 }
 0x259   : > { %v2113_v1 = vpop.f32.mrf.mxu1 }
 0x25a   : > { %v1303_v2 = vsel %vm910_vm3, %v1297_v0, -inf }
 0x25b   : > { %1304 = vmax.xlane.f32.xlu1 %v1303_v2  ;;  %v1299_v4 = vpop.f32.mrf.mxu1 }
 0x25c   : > { %v1300_v6 = vadd.f32 %v1990_v38, %v1299_v4 }
 0x25d   : > { %v2114_v7 = vpop.f32.mrf.mxu1 }
 0x25e   : > { %v1306_v8 = vsel %vm910_vm3, %v1300_v6, -inf }
 0x25f   : > { %1307 = vmax.xlane.f32.xlu1 %v1306_v8 }
 0x2cc   : > { %v913_v9 = vpop.xlane.xlu0 %912 }
 0x2cd   : > { %v917_v10 = vsub.f32 %v904_v40, %v913_v9 }
 0x2cf   : > { %v919_v11 = vmul.f32 1.442695, %v917_v10 }
 0x2d0   : > { %v916_v12 = vpop.xlane.xlu1 %915 }
 0x2d1   : > { %2215 = vpow2.f32 %v919_v11  ;;  %v918_v14 = vsub.f32 %v907_v44, %v916_v12 }
 0x2d3   : > { %v921_v17 = vmul.f32 1.442695, %v918_v14 }
 0x2d4   : > { %v1046_v19 = vpop.xlane.xlu1 %1045 }
 0x2d5   : > { %2217 = vpow2.f32 %v921_v17  ;;  %v1050_v21 = vsub.f32 %v1038_v48, %v1046_v19 }
 0x2d7   : > { %v1052_v22 = vmul.f32 1.442695, %v1050_v21 }
 0x2d8   : > { %v1049_v23 = vpop.xlane.xlu1 %1048 }
 0x2d9   : > { %2219 = vpow2.f32 %v1052_v22  ;;  %v1051_v24 = vsub.f32 %v1041_v52, %v1049_v23 }
 0x2db   : > { %v1054_v25 = vmul.f32 1.442695, %v1051_v24 }
 0x2dc   : > { %v1175_v26 = vpop.xlane.xlu1 %1174 }
 0x2dd   : > { %2221 = vpow2.f32 %v1054_v25  ;;  %v1179_v28 = vsub.f32 %v1167_v56, %v1175_v26 }
 0x2de   : > { %v2216_v30 = vpop.eup %2215 }
 0x2df   : > { %v1181_v32 = vmul.f32 1.442695, %v1179_v28  ;;  %v923_v33 = vsel %vm910_vm3, %v2216_v30, 0.0 }
 0x2e0   : > { %v1178_v34 = vpop.xlane.xlu1 %1177  ;;  %924 = vadd.xlane.f32.xlu1 %v923_v33 }
 0x2e1   : > { %2223 = vpow2.f32 %v1181_v32  ;;  %v1180_v35 = vsub.f32 %v1170_v60, %v1178_v34  ;;  %v2207_v32 = vld [vmem:[%s2443_s13] sm:$0xff]  }
 0x2e2   : > { %v2218_v36 = vpop.eup %2217 }
 0x2e3   : > { %v1183_v37 = vmul.f32 1.442695, %v1180_v35  ;;  %v926_v38 = vsel %vm910_vm3, %v2218_v36, 0.0 }
 0x2e4   : > { %v1305_v39 = vpop.xlane.xlu1 %1304  ;;  %927 = vadd.xlane.f32.xlu1 %v926_v38 }
 0x2e5   : > { %2225 = vpow2.f32 %v1183_v37  ;;  %v1309_v40 = vsub.f32 %v1297_v0, %v1305_v39 }
 0x2e6   : > { %v2220_v41 = vpop.eup %2219 }
 0x2e7   : > { %v1311_v42 = vmul.f32 1.442695, %v1309_v40  ;;  %v1056_v43 = vsel %vm910_vm3, %v2220_v41, 0.0 }
 0x2e8   : > { %1057 = vadd.xlane.f32.xlu0 %v1056_v43  ;;  %v1308_v44 = vpop.xlane.xlu1 %1307  ;;  %v981_v43 = vunpack.c.l.bf16 %v2517_v16 }
 0x2e9   : > { %2227 = vpow2.f32 %v1311_v42  ;;  %v1310_v45 = vsub.f32 %v1300_v6, %v1308_v44  ;;  %v1240_v44 = vunpack.c.l.bf16 %v2542_v27 }
 0x2ea   : > { %v2222_v46 = vpop.eup %2221 }
 0x2eb   : > { %v1313_v47 = vmul.f32 1.442695, %v1310_v45  ;;  %v1059_v48 = vsel %vm910_vm3, %v2222_v46, 0.0  ;;  %v1243_v45 = vsub.s32 2, %v2512_v15 }
 0x2ec   : > { %1060 = vadd.xlane.f32.xlu1 %v1059_v48  ;;  %v1370_v48 = vunpack.c.l.bf16 %v2553_v31 }
 0x2ed   : > { %2229 = vpow2.f32 %v1313_v47 }
 0x2ee   : > { %v2224_v49 = vpop.eup %2223 }
 0x2ef   : > { %v1185_v50 = vsel %vm910_vm3, %v2224_v49, 0.0 }
 0x2f0   : > { %1186 = vadd.xlane.f32.xlu0 %v1185_v50 }
 0x2f2   : > { %v2226_v51 = vpop.eup %2225 }
 0x2f3   : > { %v1188_v52 = vsel %vm910_vm3, %v2226_v51, 0.0 }
 0x2f4   : > { %1189 = vadd.xlane.f32.xlu1 %v1188_v52  ;;  %v1244_v52 = vrot.slane %v1240_v44, %v1243_v45  ;;  %v2003_v45 = vld [vmem:[%s2762_s21] ss:$0 sm:$0xff] }
 0x2f6   : > { %v2228_v53 = vpop.eup %2227 }
 0x2f7   : > { %v1315_v54 = vsel %vm910_vm3, %v2228_v53, 0.0 }
 0x2f8   : > { %1316 = vadd.xlane.f32.xlu0 %v1315_v54 }
 0x2fa   : > { %v2230_v55 = vpop.eup %2229 }
 0x2fb   : > { %v1318_v56 = vsel %vm910_vm3, %v2230_v55, 0.0 }
 0x2fc   : > { %1319 = vadd.xlane.f32.xlu1 %v1318_v56 }
 0x30e   : > { %934 = vrot.lane.b32.xlu0 %v2509_v13, %s2300_s7 }
 0x369   : > { %v925_v57 = vpop.xlane.xlu1 %924 }
 0x36d   : > { %v928_v58 = vpop.xlane.xlu1 %927 }
 0x36e   : > { %2231 = vrcp.f32 %v928_v58 }
 0x36f   : > { %2233 = vrcp.f32 %v925_v57 }
 0x371   : > { %v1058_v60 = vpop.xlane.xlu0 %1057 }
 0x375   : > { %v1061_v59 = vpop.xlane.xlu1 %1060 }
 0x376   : > { %2235 = vrcp.f32 %v1061_v59 }
 0x377   : > { %2237 = vrcp.f32 %v1058_v60 }
 0x379   : > { %v1187_v61 = vpop.xlane.xlu0 %1186 }
 0x37b   : > { %v2232_v62 = vpop.eup %2231 }
 0x37c   : > { %v2234_v1 = vpop.eup %2233  ;;  %v932_v2 = vmul.f32 %v2232_v62, %v2218_v36 }
 0x37d   : > { %v1190_v63 = vpop.xlane.xlu1 %1189  ;;  %v931_v6 = vmul.f32 %v2234_v1, %v2216_v30  ;;  %v2206_v30 = vld [vmem:[%s2443_s13 + $0x8] sm:$0xff]   ;;  %s2767_s13 = sld [smem:[#allocation3_spill]] }
 0x37e   : > { %2239 = vrcp.f32 %v1190_v63  ;;  %2122 = vmatpush3.bf16.msra.mxu1 %v2206_v30 }
 0x37f   : > { %2241 = vrcp.f32 %v1187_v61  ;;  %v933_v13 = vpack.c.bf16 %v932_v2, %v931_v6  ;;  %2123 = vmatprep.subr.bf16.mxu1 %v2297_v3  ;;  %v768_v6 = vunpack.c.l.bf16 %v2494_v5 }
 0x381   : > { %v1317_v0 = vpop.xlane.xlu0 %1316 }
 0x382   : > { %2124 = vmatpush3.bf16.msra.mxu1 %v2207_v32 }
 0x383   : > { %v2236_v7 = vpop.eup %2235  ;;  %2137 = vmatprep.subr.bf16.mxu1 %v2297_v3  ;;  %p2019_p8 = scmp.ne.s32.totalorder %s2767_s13, 1 }
 0x384   : > { %v2238_v9 = vpop.eup %2237  ;;  %v1065_v10 = vmul.f32 %v2236_v7, %v2222_v46  ;;  %s2769_s21 = sld [smem:[#allocation19_spill]] (!%p2019_p8) }
 0x385   : > { %v935_v4 = vpop.permute.xlu0 %934  ;;  %v1320_v8 = vpop.xlane.xlu1 %1319  ;;  %v1064_v11 = vmul.f32 %v2238_v9, %v2220_v41  ;;  %v1111_v41 = vunpack.c.l.bf16 %v2527_v20 }
 0x386   : > { %2080 = vmatpush3.bf16.msra.mxu0 %v935_v4  ;;  %2243 = vrcp.f32 %v1320_v8 }
 0x387   : > { %2091 = vmatprep.subr.bf16.mxu0 %v2297_v3  ;;  %2245 = vrcp.f32 %v1317_v0  ;;  %v1066_v12 = vpack.c.bf16 %v1065_v10, %v1064_v11  ;;  %v1115_v47 = vrot.slane %v1111_v41, %v2546_v29  ;;  %v769_v10 = vunpack.c.h.bf16 %v2494_v5 }
 0x389   : > { %2082 = vmatmul.mubr.msk.bf16.vlgmr.msra.gmra.mxu0 %vm910_vm3, %v933_v13 }
 0x38a   : > { %2092 = vmatpush3.bf16.msra.mxu0 %v935_v4  ;;  %2093 = vmatprep.mubr.msk.bf16.mxu0 %vm2298_vm1, %v2297_v3 }
 0x38b   : > { %2103 = vmatprep.subr.bf16.mxu0 %v2297_v3  ;;  %v2240_v14 = vpop.eup %2239 }
 0x38c   : > { %v2242_v17 = vpop.eup %2241  ;;  %v1194_v19 = vmul.f32 %v2240_v14, %v2226_v51  ;;  %v985_v51 = vrot.slane %v981_v43, %v2522_v18 }
 0x38d   : > { %v1193_v21 = vmul.f32 %v2242_v17, %v2224_v49  ;;  %v1373_v49 = vsub.s32 3, %v2512_v15 }
 0x38f   : > { %v1195_v22 = vpack.c.bf16 %v1194_v19, %v1193_v21 }
 0x391   : > { %2094 = vmatmul.mubr.msk.bf16.vlgmr.msra.gmra.mxu0 %vm910_vm3, %v1066_v12 }
 0x392   : > { %2104 = vmatpush3.bf16.msra.mxu0 %v935_v4  ;;  %2105 = vmatprep.mubr.msk.bf16.mxu0 %vm2298_vm1, %v2297_v3 }
 0x393   : > { %2115 = vmatprep.subr.bf16.mxu0 %v2297_v3  ;;  %v2244_v23 = vpop.eup %2243 }
 0x394   : > { %v2246_v24 = vpop.eup %2245  ;;  %v1324_v25 = vmul.f32 %v2244_v23, %v2230_v55  ;;  %v1374_v55 = vrot.slane %v1370_v48, %v1373_v49  ;;  %v2004_v49 = vld [vmem:[%s2763_s24] ss:$0 sm:$0xff] }
 0x395   : > { %v1323_v26 = vmul.f32 %v2246_v24, %v2228_v53 }
 0x397   : > { %v1325_v28 = vpack.c.bf16 %v1324_v25, %v1323_v26 }
 0x399   : > { %2106 = vmatmul.mubr.msk.bf16.vlgmr.msra.gmra.mxu0 %vm910_vm3, %v1195_v22 }
 0x39a   : > { %2116 = vmatpush3.bf16.msra.mxu0 %v935_v4  ;;  %2117 = vmatprep.mubr.msk.bf16.mxu0 %vm2298_vm1, %v2297_v3  ;;  %v1999_v4 = vld [vmem:[%s2761_s29] ss:$0 sm:$0xff]  ;;  %s2768_s29 = sld [smem:[#allocation18_spill]] (!%p2019_p8) }
 0x39b   : > { %2129 = vmatprep.subr.bf16.mxu0 %v2297_v3 }
 0x3a1   : > { %2118 = vmatmul.mubr.msk.bf16.vlgmr.msra.gmra.mxu0 %vm910_vm3, %v1325_v28 }
 0x3a2   : > { %2133 = vmatprep.mubr.msk.bf16.mxu0 %vm2298_vm1, %v2297_v3 }
 0x449   : > { %v974_v33 = vpop.f32.mrf.mxu0 }
 0x44a   : > { %v986_v56 = vmul.f32 %v985_v51, %v974_v33 }
 0x44b   : > { %v2083_v34 = vpop.f32.mrf.mxu0 }
 0x44c   : > { %v2208_v34 = vld [vmem:[%s2460_s27 + $0x8] sm:$0xff]  }
 0x44d   : > { %v977_v35 = vpop.f32.mrf.mxu0  ;;  %2130 = vmatpush3.bf16.msra.mxu0 %v2208_v34 }
 0x44e   : > { %v987_v27 = vmul.f32 %v985_v51, %v977_v35  ;;  %v2209_v35 = vld [vmem:[%s2460_s27] sm:$0xff]   ;;  %2131 = vmatprep.subr.bf16.mxu0 %v2297_v3 }
 0x44f   : > { %v2084_v36 = vpop.f32.mrf.mxu0 }
 0x450   : > { %v2210_v36 = vld [vmem:[%s2470_s12 + $0x18] sm:$0xff]  }
 0x451   : > { %v1104_v37 = vpop.f32.mrf.mxu0  ;;  %2132 = vmatpush3.bf16.msra.mxu0 %v2209_v35 }
 0x452   : > { %v1116_v20 = vmul.f32 %v1115_v47, %v1104_v37 }
 0x453   : > { %v2095_v38 = vpop.f32.mrf.mxu0 }
 0x454   : > { %v1118_v29 = vadd.f32 %v1116_v20, %v986_v56  ;;  %v2211_v20 = vld [vmem:[%s2470_s12 + $0x10] sm:$0xff]  }
 0x455   : > { %v1107_v39 = vpop.f32.mrf.mxu0 }
 0x456   : > { %v1117_v54 = vmul.f32 %v1115_v47, %v1107_v39 }
 0x457   : > { %v2096_v40 = vpop.f32.mrf.mxu0 }
 0x458   : > { %v1119_v60 = vadd.f32 %v1117_v54, %v987_v27  ;;  %v2212_v54 = vld [vmem:[%s2470_s12 + $0x8] sm:$0xff]  }
 0x459   : > { %v1233_v42 = vpop.f32.mrf.mxu0 }
 0x45a   : > { %v1245_v57 = vmul.f32 %v1244_v52, %v1233_v42 }
 0x45b   : > { %v2107_v46 = vpop.f32.mrf.mxu0 }
 0x45c   : > { %v1247_v15 = vadd.f32 %v1245_v57, %v1118_v29 }
 0x45d   : > { %v1236_v50 = vpop.f32.mrf.mxu0 }
 0x45e   : > { %v1246_v58 = vmul.f32 %v1244_v52, %v1236_v50 }
 0x45f   : > { %v2108_v53 = vpop.f32.mrf.mxu0 }
 0x460   : > { %v1248_v62 = vadd.f32 %v1246_v58, %v1119_v60 }
 0x461   : > { %v1363_v16 = vpop.f32.mrf.mxu0 }
 0x462   : > { %v1375_v31 = vmul.f32 %v1374_v55, %v1363_v16  ;;  %v2005_v16 = vld [vmem:[%s2765_s19] ss:$0 sm:$0xff] }
 0x463   : > { %v2119_v59 = vpop.f32.mrf.mxu0 }
 0x464   : > { %v1377_v0 = vadd.f32 %v1375_v31, %v1247_v15 }
 0x465   : > { %v1366_v61 = vpop.f32.mrf.mxu0 }
 0x466   : > { %v1376_v63 = vmul.f32 %v1374_v55, %v1366_v61  ;;  %v2213_v55 = vld [vmem:[%s2470_s12] sm:$0xff]  }
 0x467   : > { %v2120_v18 = vpop.f32.mrf.mxu0 }
 0x468   : > { %v1378_v1 = vadd.f32 %v1376_v63, %v1248_v62 }
 0x46a   : > { %v1379_v2 = vpack.c.bf16 %v1378_v1, %v1377_v0 }
 0x46c   : > { %2126 = vmatmul.mubr.msk.bf16.vlgmr.msra.gmra.mxu1 %vm798_vm2, %v1379_v2 }
 0x46d   : > { %2145 = vmatprep.mubr.msk.bf16.mxu1 %vm2298_vm1, %v2297_v3  ;;  %2138 = vmatpush3.bf16.msra.mxu1 %v2210_v36 }
 0x46e   : > { %2139 = vmatprep.subr.bf16.mxu1 %v2297_v3 }
 0x471   : > { %2140 = vmatpush3.bf16.msra.mxu1 %v2211_v20 }
 0x472   : > { %2141 = vmatprep.subr.bf16.mxu1 %v2297_v3 }
 0x475   : > { %2142 = vmatpush3.bf16.msra.mxu1 %v2212_v54 }
 0x476   : > { %2143 = vmatprep.subr.bf16.mxu1 %v2297_v3  ;;  %v2009_v3 = vld [vmem:[%s743_s2] ss:$0 sm:$0xff] }
 0x479   : > { %2144 = vmatpush3.bf16.msra.mxu1 %v2213_v55 }
 0x52c   : > { %v1440_v13 = vpop.f32.mrf.mxu1 }
 0x52d   : > { %v1441_v7 = vadd.f32 %v1999_v4, %v1440_v13 }
 0x52e   : > { %v2127_v8 = vpop.f32.mrf.mxu1 }
 0x52f   : > { %v1447_v9 = vadd.f32 %v1441_v7, %v768_v6 }
 0x530   : > { %v1443_v11 = vpop.f32.mrf.mxu1 }
 0x531   : > { %v1444_v12 = vadd.f32 %v1999_v4, %v1443_v11  ;;  %v1451_v14 = vsel %vm798_vm2, %v1447_v9, 0.0 }
 0x532   : > { %v2128_v17 = vpop.f32.mrf.mxu1  ;;  %1452 = vadd.xlane.f32.xlu1 %v1451_v14 }
 0x533   : > { %v1448_v19 = vadd.f32 %v1444_v12, %v769_v10 }
 0x535   : > { %v1454_v21 = vsel %vm798_vm2, %v1448_v19, 0.0 }
 0x536   : > { %1455 = vadd.xlane.f32.xlu1 %v1454_v21 }
 0x5bb   : > { %v1453_v22 = vpop.xlane.xlu1 %1452 }
 0x5bc   : > { %v1458_v23 = vmul.f32 0.03125, %v1453_v22 }
 0x5be   : > { %v1460_v24 = vsub.f32 %v1447_v9, %v1458_v23 }
 0x5bf   : > { %v1456_v25 = vpop.xlane.xlu1 %1455 }
 0x5c0   : > { %v1459_v26 = vmul.f32 0.03125, %v1456_v25  ;;  %v1462_v28 = vmul.f32 %v1460_v24, %v1460_v24 }
 0x5c2   : > { %v1461_v5 = vsub.f32 %v1448_v19, %v1459_v26  ;;  %v1464_v30 = vsel %vm798_vm2, %v1462_v28, 0.0 }
 0x5c3   : > { %1465 = vadd.xlane.f32.xlu1 %v1464_v30  ;;  %v2015_v30 = vld [vmem:[%s746_s25] ss:$0 sm:$0xff] }
 0x5c4   : > { %v1463_v32 = vmul.f32 %v1461_v5, %v1461_v5 }
 0x5c6   : > { %v1467_v33 = vsel %vm798_vm2, %v1463_v32, 0.0 }
 0x5c7   : > { %1468 = vadd.xlane.f32.xlu1 %v1467_v33  ;;  %v2016_v33 = vld [vmem:[%s749_s3] ss:$0 sm:$0xff] }
 0x64c   : > { %v1466_v37 = vpop.xlane.xlu1 %1465 }
 0x64d   : > { %v1470_v38 = vmul.f32 0.03125, %v1466_v37 }
 0x64f   : > { %v1472_v39 = vadd.f32 1e-05, %v1470_v38 }
 0x650   : > { %v1469_v40 = vpop.xlane.xlu1 %1468 }
 0x651   : > { %2247 = vrsqrt.f32 %v1472_v39  ;;  %v1471_v41 = vmul.f32 0.03125, %v1469_v40 }
 0x653   : > { %v1473_v42 = vadd.f32 1e-05, %v1471_v41 }
 0x655   : > { %2249 = vrsqrt.f32 %v1473_v42 }
 0x65e   : > { %v2248_v43 = vpop.eup %2247 }
 0x65f   : > { %v1476_v44 = vmul.f32 %v2248_v43, %v1460_v24 }
 0x661   : > { %v1484_v48 = vmul.f32 %v2003_v45, %v1476_v44 }
 0x662   : > { %v2250_v46 = vpop.eup %2249 }
 0x663   : > { %v1477_v47 = vmul.f32 %v2250_v46, %v1461_v5  ;;  %v1492_v51 = vadd.f32 %v2004_v49, %v1484_v48 }
 0x665   : > { %v1485_v50 = vmul.f32 %v2003_v45, %v1477_v47 }
 0x667   : > { %v1493_v52 = vadd.f32 %v2004_v49, %v1485_v50 }
 0x669   : > { %v1494_v53 = vpack.c.bf16 %v1493_v52, %v1492_v51 }
 0x66b   : > { %2134 = vmatmul.mubr.msk.bf16.vlgmr.msra.gmra.mxu0 %vm798_vm2, %v1494_v53 }
 0x72b   : > { %v1555_v56 = vpop.f32.mrf.mxu0 }
 0x72c   : > { %v1556_v57 = vadd.f32 %v2005_v16, %v1555_v56 }
 0x72d   : > { %v2135_v27 = vpop.f32.mrf.mxu0 }
 0x72e   : > { %v1562_v60 = vmax.f32 %v1556_v57, 0.0 }
 0x72f   : > { %v1558_v58 = vpop.f32.mrf.mxu0 }
 0x730   : > { %v1559_v59 = vadd.f32 %v2005_v16, %v1558_v58 }
 0x731   : > { %v2136_v29 = vpop.f32.mrf.mxu0 }
 0x732   : > { %v1563_v31 = vmax.f32 %v1559_v59, 0.0 }
 0x734   : > { %v1564_v61 = vpack.c.bf16 %v1563_v31, %v1562_v60 }
 0x736   : > { %2146 = vmatmul.mubr.msk.bf16.vlgmr.msra.gmra.mxu1 %vm1604_vm4, %v1564_v61 }
 0x7f6   : > { %v1642_v15 = vpop.f32.mrf.mxu1 }
 0x7f7   : > { %v1643_v62 = vadd.f32 %v2009_v3, %v1642_v15 }
 0x7f8   : > { %v2147_v63 = vpop.f32.mrf.mxu1 }
 0x7f9   : > { %v1649_v18 = vadd.f32 %v1643_v62, %v1492_v51 }
 0x7fa   : > { %v1645_v0 = vpop.f32.mrf.mxu1 }
 0x7fb   : > { %v1646_v1 = vadd.f32 %v2009_v3, %v1645_v0  ;;  %v1653_v2 = vsel %vm798_vm2, %v1649_v18, 0.0 }
 0x7fc   : > { %1654 = vadd.xlane.f32.xlu1 %v1653_v2  ;;  %v2148_v4 = vpop.f32.mrf.mxu1 }
 0x7fd   : > { %v1650_v6 = vadd.f32 %v1646_v1, %v1493_v52 }
 0x7ff   : > { %v1656_v13 = vsel %vm798_vm2, %v1650_v6, 0.0 }
 0x800   : > { %1657 = vadd.xlane.f32.xlu1 %v1656_v13 }
 0x885   : > { %v1655_v7 = vpop.xlane.xlu1 %1654 }
 0x886   : > { %v1659_v8 = vmul.f32 0.03125, %v1655_v7 }
 0x888   : > { %v1661_v9 = vsub.f32 %v1649_v18, %v1659_v8 }
 0x889   : > { %v1658_v10 = vpop.xlane.xlu1 %1657 }
 0x88a   : > { %v1660_v11 = vmul.f32 0.03125, %v1658_v10  ;;  %v1663_v12 = vmul.f32 %v1661_v9, %v1661_v9 }
 0x88c   : > { %v1662_v14 = vsub.f32 %v1650_v6, %v1660_v11  ;;  %v1665_v17 = vsel %vm798_vm2, %v1663_v12, 0.0 }
 0x88d   : > { %1666 = vadd.xlane.f32.xlu0 %v1665_v17 }
 0x88e   : > { %v1664_v19 = vmul.f32 %v1662_v14, %v1662_v14 }
 0x890   : > { %v1668_v21 = vsel %vm798_vm2, %v1664_v19, 0.0 }
 0x891   : > { %1669 = vadd.xlane.f32.xlu1 %v1668_v21 }
 0x916   : > { %v1667_v22 = vpop.xlane.xlu0 %1666 }
 0x917   : > { %v1671_v23 = vmul.f32 0.03125, %v1667_v22 }
 0x919   : > { %v1673_v24 = vadd.f32 1e-05, %v1671_v23 }
 0x91a   : > { %v1670_v25 = vpop.xlane.xlu1 %1669 }
 0x91b   : > { %2251 = vrsqrt.f32 %v1673_v24  ;;  %v1672_v26 = vmul.f32 0.03125, %v1670_v25 }
 0x91d   : > { %v1674_v28 = vadd.f32 1e-05, %v1672_v26 }
 0x91f   : > { %2253 = vrsqrt.f32 %v1674_v28 }
 0x928   : > { %v2252_v5 = vpop.eup %2251 }
 0x929   : > { %v1677_v32 = vmul.f32 %v2252_v5, %v1661_v9 }
 0x92b   : > { %v1685_v34 = vmul.f32 %v2015_v30, %v1677_v32 }
 0x92c   : > { %v2254_v35 = vpop.eup %2253 }
 0x92d   : > { %v1693_v36 = vadd.f32 %v2016_v33, %v1685_v34  ;;  %v1678_v37 = vmul.f32 %v2254_v35, %v1662_v14 }
 0x92f   : > { %v2030_v38 = vpack.c.bf16 %v1693_v36, %v1693_v36  ;;  %v1686_v39 = vmul.f32 %v2015_v30, %v1678_v37 }
 0x931   : > { %1704 = vst.msk [vmem:[#allocation2] sm:$0xf] %vm1703_vm5, %v2030_v38  ;;  %v1694_v40 = vadd.f32 %v2016_v33, %v1686_v39  ;;  %1709 = sbr.rel (%p2019_p8) target bundleno = 2567 (0xa07), region = 96 }
 0x933   : > { %v1695_v41 = vpack.c.bf16 %v1694_v40, %v1693_v36  ;;  %v2031_v42 = vpack.c.bf16 %v1694_v40, %v1694_v40 }
 0x935   : > { %1705 = vst.msk [vmem:[#allocation2 + $0x4] sm:$0xf] %vm1703_vm5, %v2031_v42 }
 0x936   : > { %v2255_v43 = vld [vmem:[%s2768_s29 + $0x8] sm:$0xff]   ;;  %v2301_v44 = vmov 0.0   ;;  %v2256_v45 = vld [vmem:[%s2768_s29] sm:$0xff]   ;;  %vm2302_vm6 = vmmov 0  }
 0x937   : > { %2149 = vmatprep.subr.bf16.mxu0 %v2301_v44  ;;  %2153 = vmatprep.mubr.msk.bf16.mxu0 %vm2302_vm6, %v2301_v44  ;;  %v2020_v46 = vld [vmem:[%s2769_s21] ss:$0 sm:$0xff] }
 0x938   : > { %2150 = vmatpush3.bf16.msra.mxu0 %v2255_v43 }
 0x939   : > { %2151 = vmatprep.subr.bf16.mxu0 %v2301_v44 }
 0x93c   : > { %2152 = vmatpush3.bf16.msra.mxu0 %v2256_v45 }
 0x93f   : > { %2154 = vmatmul.mubr.msk.bf16.vlgmr.msra.gmra.mxu0 %vm798_vm2, %v1695_v41 }
 0x9ff   : > { %v1770_v47 = vpop.f32.mrf.mxu0 }
 0xa00   : > { %v1771_v48 = vadd.f32 %v2020_v46, %v1770_v47 }
 0xa01   : > { %v2155_v49 = vpop.f32.mrf.mxu0 }
 0xa02   : > { %1777 = vst [vmem:[%s2487_s8] sm:$0xff] %v1771_v48 }
 0xa03   : > { %v1773_v50 = vpop.f32.mrf.mxu0 }
 0xa04   : > { %v1774_v51 = vadd.f32 %v2020_v46, %v1773_v50 }
 0xa05   : > { %v2156_v52 = vpop.f32.mrf.mxu0 }
 0xa06   : > { %1778 = vst [vmem:[%s2487_s8 + $0x8] sm:$0xff] %v1774_v51 }
 0xa07 PF: > { %s2770_s0 = sld [smem:[#allocation6_spill]] }
 0xa08   : > { %s2771_s24 = sld [smem:[#allocation4_spill]] }
 0xa09   : > { %s2772_s25 = sld [smem:[#allocation5_spill]] }
 0xa0a   : > { %s2773_s26 = sld [smem:[#allocation7_spill]] }
 0xa0b   : > { %s2774_s27 = sld [smem:[#allocation8_spill]] }
 0xa0d   : > { %s27_s28 = sadd.s32 1, %s2770_s0  }
 0xa0e   : > { %p24_p9 = scmp.ge.s32.totalorder %s27_s28, 6  }
 0xa10   :  { %26 = sbr.rel (!%p24_p9) target bundleno = 13 (0xd), region = 162 }

</bundles_post_ra>
